<compile_context>
chip_gen: v7x
topology: tpu7x:2x2x1
jax: 0.10.0
libtpu: 0.0.40
codegen_flags: <defaults>
</compile_context>

<pallas_src>
import jax
import jax.numpy as jnp
from jax.experimental import pallas as pl
from jax.experimental.pallas import tpu as pltpu

BN_EPS = 1e-5
LANE = 128


# ---------------------------------------------------------------------------
# Kernel: 5 matmuls + bias + ReLU for one batch tile; weights VMEM-resident.
# ---------------------------------------------------------------------------
def mlp_kernel(x_ref, w1_ref, bh_ref, wh_ref, w5_ref, b5_ref, out_ref):
    bh = bh_ref[...]                     # (4, 64)  f32, loaded once
    b5 = b5_ref[...]                     # (1, 128) f32

    # layer 1: Linear(896 -> 64) (BN folded, K zero-padded) + ReLU
    h = jnp.dot(x_ref[...], w1_ref[...], preferred_element_type=jnp.float32)
    h = jnp.maximum(h + bh[0:1, :], 0.0)

    # layers 2-4: Linear(64 -> 64) (BN folded) + ReLU, weights stacked (3,64,64)
    for i in range(3):
        h = jnp.dot(h.astype(jnp.bfloat16), wh_ref[i],
                    preferred_element_type=jnp.float32)
        h = jnp.maximum(h + bh[i + 1:i + 2, :], 0.0)

    # output head: Linear(64 -> 128 padded), no activation
    out_ref[...] = jnp.dot(h.astype(jnp.bfloat16), w5_ref[...],
                           preferred_element_type=jnp.float32) + b5


# ---------------------------------------------------------------------------
# Wrapper
# ---------------------------------------------------------------------------
def classifier_mlp_forward(x, fused, out_dim=55, block_b=128):
    """x: (B, num_channels*input_size) float32. Returns (B, out_dim) float32."""
    B, K = x.shape
    K_PAD = fused["w1"].shape[0]
    N_PAD = fused["w5"].shape[1]
    H = fused["wh"].shape[2]

    # batch tile: 128 when enough rows, otherwise B rounded up to sublane (8)
    TB = block_b if B >= block_b else -(-B // 8) * 8
    B_PAD = -(-B // TB) * TB

    xp = x
    if K_PAD > K:
        xp = jnp.pad(xp, ((0, 0), (0, K_PAD - K)))
    if B_PAD > B:
        xp = jnp.pad(xp, ((0, B_PAD - B), (0, 0)))
    xp = xp.astype(jnp.bfloat16)         # bf16 MXU operand; accum stays f32

    grid = (B_PAD // TB,)

    flops = 2 * B_PAD * (K_PAD * H + 3 * H * H + H * N_PAD)
    bytes_accessed = int(
        xp.size * 2
        + fused["w1"].size * 2 + fused["wh"].size * 2 + fused["w5"].size * 2
        + fused["bh"].size * 4 + fused["b5"].size * 4
        + B_PAD * N_PAD * 4)

    out = pl.pallas_call(
        mlp_kernel,
        out_shape=jax.ShapeDtypeStruct((B_PAD, N_PAD), jnp.float32),
        grid=grid,
        in_specs=[
            pl.BlockSpec((TB, K_PAD), lambda i: (i, 0)),            # x tiles
            pl.BlockSpec(fused["w1"].shape, lambda i: (0, 0)),      # resident
            pl.BlockSpec(fused["bh"].shape, lambda i: (0, 0)),      # resident
            pl.BlockSpec(fused["wh"].shape, lambda i: (0, 0, 0)),   # resident
            pl.BlockSpec(fused["w5"].shape, lambda i: (0, 0)),      # resident
            pl.BlockSpec(fused["b5"].shape, lambda i: (0, 0)),      # resident
        ],
        out_specs=pl.BlockSpec((TB, N_PAD), lambda i: (i, 0)),
        compiler_params=pltpu.CompilerParams(
            dimension_semantics=("parallel",)),                     # megacore
        cost_estimate=pl.CostEstimate(
            flops=flops, transcendentals=0, bytes_accessed=bytes_accessed),
    )(xp, fused["w1"], fused["bh"], fused["wh"], fused["w5"], fused["b5"])

    return out[:B, :out_dim]


def prepare_fused_params(params):
    """Fold inference-mode BatchNorm into the preceding Linear, pad for lane
    alignment, cast weights to bf16.  Returns:
      w1 (896,64) bf16, wh (3,64,64) bf16, bh (4,64) f32,
      w5 (64,128) bf16, b5 (1,128) f32."""
    wh_list, bh_rows = [], []
    for i in range(1, 5):
        s = params[f"g{i}"] * jax.lax.rsqrt(params[f"rv{i}"] + BN_EPS)   # (1, 64)
        w = params[f"w{i}"] * s                                          # (din, 64)
        b = (params[f"b{i}"] - params[f"rm{i}"]) * s + params[f"be{i}"]  # (1, 64)
        if i == 1:
            w1 = w
        else:
            wh_list.append(w)
        bh_rows.append(b)

    # pad layer-1 K (784 -> 896) so the MXU K dim has no ragged partial tile
    din = w1.shape[0]
    k_pad = -(-din // LANE) * LANE
    if k_pad > din:
        w1 = jnp.pad(w1, ((0, k_pad - din), (0, 0)))

    # pad output N (55 -> 128) so the final store is a full lane-dense column
    w5, b5 = params["w5"], params["b5"]
    dout = w5.shape[1]
    n_pad = -(-dout // LANE) * LANE
    if n_pad > dout:
        w5 = jnp.pad(w5, ((0, 0), (0, n_pad - dout)))
        b5 = jnp.pad(b5, ((0, 0), (0, n_pad - dout)))

    return {
        "w1": w1.astype(jnp.bfloat16),
        "wh": jnp.stack(wh_list, axis=0).astype(jnp.bfloat16),   # (3, 64, 64)
        "bh": jnp.concatenate(bh_rows, axis=0),                  # (4, 64)  f32
        "w5": w5.astype(jnp.bfloat16),
        "b5": b5,                                                # (1, 128) f32
    }


def init_params(key, input_size=784, num_channels=1, layer_size=64, output_shape=55):
    """Deterministic init matching ClassifierMLP._weight_init:
    Linear weight ~ N(0, 0.2), bias ~ N(0.5, 0.01); BN at PyTorch defaults."""
    in_dim = num_channels * input_size
    dims = [(in_dim, layer_size), (layer_size, layer_size),
            (layer_size, layer_size), (layer_size, layer_size),
            (layer_size, output_shape)]
    params = {}
    keys = jax.random.split(key, 2 * len(dims))
    for i, (din, dout) in enumerate(dims, start=1):
        kw, kb = keys[2 * (i - 1)], keys[2 * (i - 1) + 1]
        # PyTorch stores (out, in); we keep (in, out) == W.T for the kernel.
        params[f"w{i}"] = 0.2 * jax.random.normal(kw, (din, dout), dtype=jnp.float32)
        params[f"b{i}"] = 0.5 + 0.01 * jax.random.normal(kb, (1, dout), dtype=jnp.float32)
    for i in range(1, 5):  # BN params for the 4 hidden layers (PyTorch defaults)
        params[f"g{i}"] = jnp.ones((1, layer_size), jnp.float32)     # gamma
        params[f"be{i}"] = jnp.zeros((1, layer_size), jnp.float32)   # beta
        params[f"rm{i}"] = jnp.zeros((1, layer_size), jnp.float32)   # running mean
        params[f"rv{i}"] = jnp.ones((1, layer_size), jnp.float32)    # running var
    return params


def reference_forward_f32(x, params):
    """Plain-JAX f32 reference (unfused, unpadded) for semantic validation."""
    h = x
    for i in range(1, 5):
        h = h @ params[f"w{i}"] + params[f"b{i}"]
        h = (h - params[f"rm{i}"]) * jax.lax.rsqrt(params[f"rv{i}"] + BN_EPS) \
            * params[f"g{i}"] + params[f"be{i}"]
        h = jnp.maximum(h, 0.0)
    return h @ params["w5"] + params["b5"]


def reference_forward_fused(x, fused, out_dim=55):
    """Plain-JAX reference with the SAME fused/padded bf16 arithmetic the
    kernel uses (tight-tolerance check of the kernel itself)."""
    K_PAD = fused["w1"].shape[0]
    xp = jnp.pad(x, ((0, 0), (0, K_PAD - x.shape[1]))).astype(jnp.bfloat16)
    h = jnp.dot(xp, fused["w1"], preferred_element_type=jnp.float32)
    h = jnp.maximum(h + fused["bh"][0:1, :], 0.0)
    for i in range(3):
        h = jnp.dot(h.astype(jnp.bfloat16), fused["wh"][i],
                    preferred_element_type=jnp.float32)
        h = jnp.maximum(h + fused["bh"][i + 1:i + 2, :], 0.0)
    out = jnp.dot(h.astype(jnp.bfloat16), fused["w5"],
                  preferred_element_type=jnp.float32) + fused["b5"]
    return out[:, :out_dim]


if __name__ == "__main__":
    key = jax.random.PRNGKey(0)
    kp, kx = jax.random.split(key)

    B, C, IMG = 256, 1, 28               # image_size=28, num_channels=1
    input_size = IMG * IMG               # 784
    params = init_params(kp, input_size=input_size, num_channels=C,
                         layer_size=64, output_shape=55)
    fused = prepare_fused_params(params)

    # The module consumes an already-flattened image: (B, num_channels*784).
    x = jax.random.normal(kx, (B, C * input_size), dtype=jnp.float32)

    out = classifier_mlp_forward(x, fused)
    out = jax.block_until_ready(out)
    assert out.shape == (B, 55), out.shape

    # 1) tight check against a plain-JAX reference using identical bf16/f32
    #    arithmetic (validates the kernel itself)
    ref_fused = reference_forward_fused(x, fused)
    assert jnp.allclose(out, ref_fused, atol=1e-3, rtol=1e-3), \
        float(jnp.max(jnp.abs(out - ref_fused)))

    # 2) loose sanity check against the full-f32 unfused reference
    #    (bf16 MXU operands => looser tolerance)
    ref_f32 = reference_forward_f32(x, params)
    assert jnp.allclose(out, ref_f32, atol=2.0, rtol=0.1), \
        float(jnp.max(jnp.abs(out - ref_f32)))

    print("KERNEL_OK")
</pallas_src>

<mosaic_0001>
module attributes {stable_mosaic.version = 11 : i64} {
  func.func @mlp_kernel(%arg0: i32, %arg1: memref<128x896xbf16, #tpu.memory_space<vmem>>, %arg2: memref<896x64xbf16, #tpu.memory_space<vmem>>, %arg3: memref<4x64xf32, #tpu.memory_space<vmem>>, %arg4: memref<3x64x64xbf16, #tpu.memory_space<vmem>>, %arg5: memref<64x128xbf16, #tpu.memory_space<vmem>>, %arg6: memref<1x128xf32, #tpu.memory_space<vmem>>, %arg7: memref<128x128xf32, #tpu.memory_space<vmem>>) attributes {dimension_semantics = [#tpu.dimension_semantics<parallel>], iteration_bounds = array<i64: 2>, scalar_prefetch = 0 : i64, scratch_operands = 0 : i64, tpu.core_type = #tpu.core_type<tc>, window_params = [{transform_indices = @transform_0, window_bounds = array<i64: 128, 896>}, {pipeline_mode = #tpu.pipeline_mode<synchronous>, transform_indices = @transform_1, window_bounds = array<i64: 896, 64>}, {pipeline_mode = #tpu.pipeline_mode<synchronous>, transform_indices = @transform_2, window_bounds = array<i64: 4, 64>}, {pipeline_mode = #tpu.pipeline_mode<synchronous>, transform_indices = @transform_3, window_bounds = array<i64: 3, 64, 64>}, {pipeline_mode = #tpu.pipeline_mode<synchronous>, transform_indices = @transform_4, window_bounds = array<i64: 64, 128>}, {pipeline_mode = #tpu.pipeline_mode<synchronous>, transform_indices = @transform_5, window_bounds = array<i64: 1, 128>}, {transform_indices = @transform_6, window_bounds = array<i64: 128, 128>}]} {
    %c0 = arith.constant 0 : index
    %c0_0 = arith.constant 0 : index
    %0 = vector.load %arg3[%c0, %c0_0] : memref<4x64xf32, #tpu.memory_space<vmem>>, vector<4x64xf32>
    %c0_1 = arith.constant 0 : index
    %c0_2 = arith.constant 0 : index
    %1 = vector.load %arg6[%c0_1, %c0_2] : memref<1x128xf32, #tpu.memory_space<vmem>>, vector<1x128xf32>
    %c0_3 = arith.constant 0 : index
    %c0_4 = arith.constant 0 : index
    %2 = vector.load %arg1[%c0_3, %c0_4] : memref<128x896xbf16, #tpu.memory_space<vmem>>, vector<128x896xbf16>
    %c0_5 = arith.constant 0 : index
    %c0_6 = arith.constant 0 : index
    %3 = vector.load %arg2[%c0_5, %c0_6] : memref<896x64xbf16, #tpu.memory_space<vmem>>, vector<896x64xbf16>
    %cst = arith.constant dense<0.000000e+00> : vector<128x64xf32>
    %4 = tpu.matmul %2, %3, %cst {dimension_numbers = #tpu.dot_dimension_numbers<[1], [0], [0], [1], [0, 0, 1, 1], [], []>} : vector<128x896xbf16>, vector<896x64xbf16>, vector<128x64xf32> -> vector<128x64xf32>
    %5 = vector.extract_strided_slice %0 {offsets = [0, 0], sizes = [1, 64], strides = [1, 1]} : vector<4x64xf32> to vector<1x64xf32>
    %6 = vector.broadcast %5 : vector<1x64xf32> to vector<128x64xf32>
    %7 = arith.addf %4, %6 : vector<128x64xf32>
    %cst_7 = arith.constant 0.000000e+00 : f32
    %8 = vector.broadcast %cst_7 : f32 to vector<128x64xf32>
    %9 = arith.maximumf %7, %8 : vector<128x64xf32>
    %10 = arith.truncf %9 : vector<128x64xf32> to vector<128x64xbf16>
    %c0_8 = arith.constant 0 : index
    %c0_9 = arith.constant 0 : index
    %c0_10 = arith.constant 0 : index
    %11 = vector.load %arg4[%c0_8, %c0_9, %c0_10] : memref<3x64x64xbf16, #tpu.memory_space<vmem>>, vector<1x64x64xbf16>
    %12 = vector.shape_cast %11 : vector<1x64x64xbf16> to vector<64x64xbf16>
    %cst_11 = arith.constant dense<0.000000e+00> : vector<128x64xf32>
    %13 = tpu.matmul %10, %12, %cst_11 {dimension_numbers = #tpu.dot_dimension_numbers<[1], [0], [0], [1], [0, 0, 1, 1], [], []>} : vector<128x64xbf16>, vector<64x64xbf16>, vector<128x64xf32> -> vector<128x64xf32>
    %14 = vector.extract_strided_slice %0 {offsets = [1, 0], sizes = [1, 64], strides = [1, 1]} : vector<4x64xf32> to vector<1x64xf32>
    %15 = vector.broadcast %14 : vector<1x64xf32> to vector<128x64xf32>
    %16 = arith.addf %13, %15 : vector<128x64xf32>
    %cst_12 = arith.constant 0.000000e+00 : f32
    %17 = vector.broadcast %cst_12 : f32 to vector<128x64xf32>
    %18 = arith.maximumf %16, %17 : vector<128x64xf32>
    %19 = arith.truncf %18 : vector<128x64xf32> to vector<128x64xbf16>
    %c1 = arith.constant 1 : index
    %c0_13 = arith.constant 0 : index
    %c0_14 = arith.constant 0 : index
    %20 = vector.load %arg4[%c1, %c0_13, %c0_14] : memref<3x64x64xbf16, #tpu.memory_space<vmem>>, vector<1x64x64xbf16>
    %21 = vector.shape_cast %20 : vector<1x64x64xbf16> to vector<64x64xbf16>
    %cst_15 = arith.constant dense<0.000000e+00> : vector<128x64xf32>
    %22 = tpu.matmul %19, %21, %cst_15 {dimension_numbers = #tpu.dot_dimension_numbers<[1], [0], [0], [1], [0, 0, 1, 1], [], []>} : vector<128x64xbf16>, vector<64x64xbf16>, vector<128x64xf32> -> vector<128x64xf32>
    %23 = vector.extract_strided_slice %0 {offsets = [2, 0], sizes = [1, 64], strides = [1, 1]} : vector<4x64xf32> to vector<1x64xf32>
    %24 = vector.broadcast %23 : vector<1x64xf32> to vector<128x64xf32>
    %25 = arith.addf %22, %24 : vector<128x64xf32>
    %cst_16 = arith.constant 0.000000e+00 : f32
    %26 = vector.broadcast %cst_16 : f32 to vector<128x64xf32>
    %27 = arith.maximumf %25, %26 : vector<128x64xf32>
    %28 = arith.truncf %27 : vector<128x64xf32> to vector<128x64xbf16>
    %c2 = arith.constant 2 : index
    %c0_17 = arith.constant 0 : index
    %c0_18 = arith.constant 0 : index
    %29 = vector.load %arg4[%c2, %c0_17, %c0_18] : memref<3x64x64xbf16, #tpu.memory_space<vmem>>, vector<1x64x64xbf16>
    %30 = vector.shape_cast %29 : vector<1x64x64xbf16> to vector<64x64xbf16>
    %cst_19 = arith.constant dense<0.000000e+00> : vector<128x64xf32>
    %31 = tpu.matmul %28, %30, %cst_19 {dimension_numbers = #tpu.dot_dimension_numbers<[1], [0], [0], [1], [0, 0, 1, 1], [], []>} : vector<128x64xbf16>, vector<64x64xbf16>, vector<128x64xf32> -> vector<128x64xf32>
    %32 = vector.extract_strided_slice %0 {offsets = [3, 0], sizes = [1, 64], strides = [1, 1]} : vector<4x64xf32> to vector<1x64xf32>
    %33 = vector.broadcast %32 : vector<1x64xf32> to vector<128x64xf32>
    %34 = arith.addf %31, %33 : vector<128x64xf32>
    %cst_20 = arith.constant 0.000000e+00 : f32
    %35 = vector.broadcast %cst_20 : f32 to vector<128x64xf32>
    %36 = arith.maximumf %34, %35 : vector<128x64xf32>
    %37 = arith.truncf %36 : vector<128x64xf32> to vector<128x64xbf16>
    %c0_21 = arith.constant 0 : index
    %c0_22 = arith.constant 0 : index
    %38 = vector.load %arg5[%c0_21, %c0_22] : memref<64x128xbf16, #tpu.memory_space<vmem>>, vector<64x128xbf16>
    %cst_23 = arith.constant dense<0.000000e+00> : vector<128x128xf32>
    %39 = tpu.matmul %37, %38, %cst_23 {dimension_numbers = #tpu.dot_dimension_numbers<[1], [0], [0], [1], [0, 0, 1, 1], [], []>} : vector<128x64xbf16>, vector<64x128xbf16>, vector<128x128xf32> -> vector<128x128xf32>
    %40 = vector.broadcast %1 : vector<1x128xf32> to vector<128x128xf32>
    %41 = arith.addf %39, %40 : vector<128x128xf32>
    %c0_24 = arith.constant 0 : index
    %c0_25 = arith.constant 0 : index
    %42 = vector.load %arg7[%c0_24, %c0_25] : memref<128x128xf32, #tpu.memory_space<vmem>>, vector<128x128xf32>
    tpu.vector_store %arg7[%c0_24, %c0_25], %41 {strides = array<i32>} : memref<128x128xf32, #tpu.memory_space<vmem>>, vector<128x128xf32>,
    return
  }
  func.func @transform_0(%arg0: i32) -> (i32, i32) {
    %c0_i32 = arith.constant 0 : i32
    %c0_i32_0 = arith.constant 0 : i32
    return %arg0, %c0_i32 : i32, i32
  }
  func.func @transform_1(%arg0: i32) -> (i32, i32) {
    %c0_i32 = arith.constant 0 : i32
    %c0_i32_0 = arith.constant 0 : i32
    %c0_i32_1 = arith.constant 0 : i32
    return %c0_i32, %c0_i32_0 : i32, i32
  }
  func.func @transform_2(%arg0: i32) -> (i32, i32) {
    %c0_i32 = arith.constant 0 : i32
    %c0_i32_0 = arith.constant 0 : i32
    %c0_i32_1 = arith.constant 0 : i32
    return %c0_i32, %c0_i32_0 : i32, i32
  }
  func.func @transform_3(%arg0: i32) -> (i32, i32, i32) {
    %c0_i32 = arith.constant 0 : i32
    %c0_i32_0 = arith.constant 0 : i32
    %c0_i32_1 = arith.constant 0 : i32
    %c0_i32_2 = arith.constant 0 : i32
    return %c0_i32, %c0_i32_0, %c0_i32_1 : i32, i32, i32
  }
  func.func @transform_4(%arg0: i32) -> (i32, i32) {
    %c0_i32 = arith.constant 0 : i32
    %c0_i32_0 = arith.constant 0 : i32
    %c0_i32_1 = arith.constant 0 : i32
    return %c0_i32, %c0_i32_0 : i32, i32
  }
  func.func @transform_5(%arg0: i32) -> (i32, i32) {
    %c0_i32 = arith.constant 0 : i32
    %c0_i32_0 = arith.constant 0 : i32
    %c0_i32_1 = arith.constant 0 : i32
    return %c0_i32, %c0_i32_0 : i32, i32
  }
  func.func @transform_6(%arg0: i32) -> (i32, i32) {
    %c0_i32 = arith.constant 0 : i32
    %c0_i32_0 = arith.constant 0 : i32
    return %arg0, %c0_i32 : i32, i32
  }
}

</mosaic_0001>

<bundles_post_ra>
// kernel: tpu_custom_call.1
= control target key start
LH: loop header
LB: loop body
LE: loop exit
PB: predicated region body
PF: predicated region fallthrough
CT: control target
= control target key end

     0   :  { %11 = vsyncpa [#allocation3], 0  ;;  %s3808_s0 = inlined_call_operand.hbm [shape: bf16[256,896], index: 0, kind: input, shape index: {}]   ;;  %s3809_s1 = inlined_call_operand.vmem [shape: bf16[896,64], index: 1, kind: input, shape index: {}]   ;;  %s3810_s2 = inlined_call_operand.vmem [shape: f32[4,64], index: 2, kind: input, shape index: {}]   ;;  %s3811_s3 = inlined_call_operand.vmem [shape: bf16[3,64,64], index: 3, kind: input, shape index: {}]   ;;  %s3812_s4 = inlined_call_operand.vmem [shape: bf16[64,128], index: 4, kind: input, shape index: {}]   ;;  %s3813_s5 = inlined_call_operand.vmem [shape: f32[1,128], index: 5, kind: input, shape index: {}]   ;;  %s3814_s6 = inlined_call_operand.hbm [shape: f32[256,128], index: 6, kind: output, shape index: {}]  }
   0x1   :  { %13 = vsyncpa [#allocation3 + $0x1], 0 }
   0x2   :  { %14 = vsyncpa [#allocation4], 0 }
   0x3   :  { %16 = vsyncpa [#allocation4 + $0x1], 0  ;;  %s3227_s21 = smov 0   ;;  %s3229_s22 = smov 0  }
   0x4   :  { %s3231_s23 = smov 0   ;;  %s3233_s24 = smov 0  }
   0x5 LB: > { %s3248_s25 = sadd.s32 4294967295, %s3184_s24   ;;  %s2300_s26 = sadd.s32 4294967294, %s3184_s24   ;;  %s3184_s24 = sphi %s3233_s24, %s3826_s24   ;;  %s3180_s23 = sphi %s3231_s23, %s3825_s23   ;;  %s3176_s22 = sphi %s3229_s22, %s3824_s22   ;;  %s3172_s21 = sphi %s3227_s21, %s3823_s21  }
   0x6   : > { %s3252_s27 = sadd.s32 1, %s3184_s24   ;;  %s29_s28 = sadd.s32 1, %s3180_s23 }
   0x7   : > { %s26_s29 = ssub.s32 %s3184_s24, %s3252_s27  ;;  %p36_p0 = scmp.ne.s32.totalorder %s3180_s23, %s3176_s22 }
   0x8   : > { %p27_p1 = scmp.eq.s32.totalorder %s26_s29, 0  ;;  %p37_p2 = scmp.eq.s32.totalorder %s3184_s24, 0 }
   0x9   : > { %p42_p3 = scmp.ne.s32.totalorder %s3176_s22, %s3172_s21  ;;  %p43_p4 = scmp.eq.s32.totalorder %s3248_s25, 0 }
   0xa   : > { %s3264_s30 = scalar_select %p27_p1, %s3180_s23, %s29_s28  }
   0xb   : > { %p38_p5 = por %p37_p2, %p36_p0  ;;  %p3266_p6 = por %p43_p4, %p42_p3 }
   0xc   : > { %p171_p7 = scmp.eq.s32.totalorder %s3248_s25, 1  ;;  %p177_p8 = scmp.eq.s32.totalorder %s2300_s26, 1 }
   0xd   : > { %p2898_p10 = scmp.lt.s32.totalorder %s3184_s24, 2  ;;  %s212_s10 = sand.u32 1, %s3180_s23  }
   0xe   : > { %p3273_p11 = por %p171_p7, %p36_p0  ;;  %p3277_p12 = por %p177_p8, %p42_p3 }
   0xf   : > { %s2884_s11 = smul.u32 7168, %s3184_s24  ;;  %p3288_p13 = pnand %p2898_p10, %p38_p5 }
  0x10   : > { %s3817_s8 = scalar_select %p3273_p11, 1, 0 }
  0x11   : > { %s3818_s9 = scalar_select %p3277_p12, 1, 0 }
  0x12   : > { %s2883_s12 = smul.u32 448, %s212_s10  ;;  %s3286_s15 = scalar_lea.hbm %s3808_s0, %s2884_s11 }
  0x13   : > { %s3294_s19 = scalar_lea.sflag [#allocation3], %s212_s10  ;;  %s3088_s20 = scalar_lea.hbm %s3286_s15, 7168 }
  0x14   : > { %s216_s17 = scalar_lea.vmem [#allocation2], %s2883_s12  ;;  %p3089_p0 = scmp.ne.s32.totalorder %s3286_s15, %s3088_s20 }
  0x15   : > { %s224_s18 = sshll.u32 %s216_s17, 4  ;;  %p3090_p1 = pneg %p3288_p13  ;;  %s3292_s18 = int_to_ptr.vmem [resolvable:$true] %s224_s18 }
  0x16   : > { %s3093_s29 = scalar_lea.hbm %s3808_s0, 14336  ;;  %p3094_p4 = scmp.lt.u32.totalorder %s3286_s15, %s3808_s0 }
  0x17   : > { %p3091_p2 = pnand %p3090_p1, %p3089_p0  ;;  %p3095_p5 = scmp.lt.u32.totalorder %s3093_s29, %s3088_s20 }
  0x18   : > { %p3097_p8 = scmp.lt.u32.totalorder %s3088_s20, %s3286_s15 }
  0x19   : > { %p3092_p3 = pneg %p3091_p2  ;;  %p3096_p7 = por %p3095_p5, %p3094_p4 }
  0x1b   : > { %p3098_p10 = por %p3097_p8, %p3096_p7 }
  0x1d   : > { %p3099_p9 = pnand %p3098_p10, %p3092_p3 }
  0x1f   : > { %3102 = shalt.err (!%p3099_p9)
}
  0x20   : > { %s3103_s10 = scalar_lea.vmem %s3292_s18, 7168  ;;  %s3186_s12 = smov [#allocation2]  }
  0x21   : > { %p3104_p0 = scmp.ne.s32.totalorder %s3292_s18, %s3103_s10  ;;  %s3108_s14 = sshll.u32 %s3186_s12, 4  ;;  %s3109_s14 = int_to_ptr.vmem [resolvable:$false] %s3108_s14 }
  0x22   : > { %s3110_s17 = scalar_lea.vmem %s3109_s14, 14336  ;;  %p3111_p11 = scmp.lt.s32.totalorder %s3292_s18, %s3109_s14 }
  0x23   : > { %p3106_p2 = pnand %p3104_p0, %p3090_p1  ;;  %p3112_p4 = scmp.lt.s32.totalorder %s3110_s17, %s3103_s10 }
  0x25   : > { %p3107_p12 = pneg %p3106_p2  ;;  %p3113_p5 = por %p3112_p4, %p3111_p11 }
  0x27   : > { %p3114_p7 = pnand %p3113_p5, %p3107_p12 }
  0x29   : > { %3117 = shalt.err (!%p3114_p7)
}
  0x2a   : > { %s3187_s20 = smov 448   ;;  %s3188_s26 = smov 28  }
  0x2b   : > { %2893 = dma.hbm_to_vmem [thread:$0]  (!%p3288_p13), %s3286_s15, 7168, %s3292_s18, %s3294_s19, %s3187_s20, %s3187_s20, %s3188_s26  }
  0x2c   : > { %p2306_p9 = scmp.ge.s32.totalorder %s3184_s24, 1  ;;  %p232_p1 = scmp.lt.s32.totalorder %s3184_s24, 3 }
  0x2e   : > { %p233_p3 = pnand %p2306_p9, %p232_p1 }
  0x2f   : > { %s3325_s28 = sand.u32 (!%p233_p3), 1, %s3176_s22  }
  0x30   : > { %236 = sbr.rel (%p233_p3) target bundleno = 1332 (0x534), region = 44  ;;  %s239_s11 = scalar_lea.sflag (!%p233_p3), [#allocation3], %s3325_s28 }
  0x31   : > { %s2885_s29 = smul.u32 (!%p233_p3), 448, %s3325_s28 }
  0x33   : > { %s3329_s13 = scalar_lea.vmem (!%p233_p3), [#allocation2], %s2885_s29 }
  0x37   : > { %3163 = dma.done.wait (%p3266_p6), %s239_s11, 7168  }
  0x38   : > { %3165 = vsyncadd (%p3266_p6), %s239_s11, 4294960128  ;;  %v2936_v0 = vld [vmem:[%s3809_s1 + $0x40] sm:$0xff]   ;;  %v2940_v4 = vld [vmem:[%s3809_s1 + $0x48] sm:$0xff]   ;;  %vm1528_vm0 = vcmask 523264   ;;  %s2490_s10 = sshll.u32 %s3248_s25, 11  ;;  %s2214_s25 = scalar_lea.sflag [#allocation4], %s3325_s28 }
  0x39   : > { %v2937_v1 = vld [vmem:[%s3809_s1] sm:$0xff]   ;;  %2491 = vmatprep.subr.bf16.mxu0 %v2936_v0  ;;  %v2941_v5 = vld [vmem:[%s3809_s1 + $0x8] sm:$0xff]   ;;  %v2944_v8 = vld [vmem:[%s3809_s1 + $0x50] sm:$0xff]   ;;  %s3759_s7 = scalar_lea.hbm %s3814_s6, %s2490_s10  ;;  %p3820_p11 = scmp.ne.s32.totalorder %s3817_s8, 0 }
  0x3a   : > { %v2938_v2 = vld [vmem:[%s3809_s1 + $0xc0] sm:$0xff]   ;;  %2492 = vmatpush3.bf16.msra.mxu0 %v2937_v1  ;;  %v2942_v6 = vld [vmem:[%s3809_s1 + $0xc8] sm:$0xff]   ;;  %v2945_v9 = vld [vmem:[%s3809_s1 + $0x10] sm:$0xff]   ;;  %s3189_s26 = smov [#allocation5]  }
  0x3b   : > { %v2939_v3 = vld [vmem:[%s3809_s1 + $0x80] sm:$0xff]   ;;  %2555 = vmatprep.subr.bf16.mxu1 %v2938_v2  ;;  %2493 = vmatprep.subr.bf16.mxu0 %v2940_v4  ;;  %v2943_v7 = vld [vmem:[%s3809_s1 + $0x88] sm:$0xff]   ;;  %v2946_v10 = vld [vmem:[%s3809_s1 + $0xd0] sm:$0xff]   ;;  %s3122_s29 = sshll.u32 %s3189_s26, 4  ;;  %s3123_s29 = int_to_ptr.vmem [resolvable:$false] %s3122_s29 }
  0x3c   : > { %2556 = vmatpush3.bf16.msra.mxu1 %v2939_v3  ;;  %v2947_v11 = vld [vmem:[%s3809_s1 + $0x90] sm:$0xff]   ;;  %v2948_v12 = vld [vmem:[%s3809_s1 + $0x58] sm:$0xff]   ;;  %v2952_v16 = vld [vmem:[%s3809_s1 + $0x60] sm:$0xff]   ;;  %s3124_s11 = scalar_lea.vmem %s3123_s29, 4096 }
  0x3d   : > { %2557 = vmatprep.subr.bf16.mxu1 %v2942_v6  ;;  %v2949_v13 = vld [vmem:[%s3809_s1 + $0x18] sm:$0xff]   ;;  %v2953_v17 = vld [vmem:[%s3809_s1 + $0x20] sm:$0xff]   ;;  %v2956_v20 = vld [vmem:[%s3809_s1 + $0x68] sm:$0xff]  }
  0x3e   : > { %2494 = vmatpush3.bf16.msra.mxu0 %v2941_v5  ;;  %v2950_v14 = vld [vmem:[%s3809_s1 + $0xd8] sm:$0xff]   ;;  %v2954_v18 = vld [vmem:[%s3809_s1 + $0xe0] sm:$0xff]   ;;  %v2957_v21 = vld [vmem:[%s3809_s1 + $0x28] sm:$0xff]  }
  0x3f   : > { %2495 = vmatprep.subr.bf16.mxu0 %v2944_v8  ;;  %v2951_v15 = vld [vmem:[%s3809_s1 + $0x98] sm:$0xff]   ;;  %v2955_v19 = vld [vmem:[%s3809_s1 + $0xa0] sm:$0xff]   ;;  %v2958_v22 = vld [vmem:[%s3809_s1 + $0xe8] sm:$0xff]  }
  0x40   : > { %2558 = vmatpush3.bf16.msra.mxu1 %v2943_v7  ;;  %v2959_v23 = vld [vmem:[%s3809_s1 + $0xa8] sm:$0xff]   ;;  %v2960_v24 = vld [vmem:[%s3809_s1 + $0x70] sm:$0xff]   ;;  %v2964_v28 = vld [vmem:[%s3809_s1 + $0x78] sm:$0xff]  }
  0x41   : > { %2559 = vmatprep.subr.bf16.mxu1 %v2946_v10  ;;  %v2961_v25 = vld [vmem:[%s3809_s1 + $0x30] sm:$0xff]   ;;  %v2965_v29 = vld [vmem:[%s3809_s1 + $0x38] sm:$0xff]   ;;  %v2969_v32 = vld [vmem:[%s3329_s13 + $0x4] ss:$28 sps:$4 sm:$0xff]  }
  0x42   : > { %2496 = vmatpush3.bf16.msra.mxu0 %v2945_v9  ;;  %v2962_v26 = vld [vmem:[%s3809_s1 + $0xf0] sm:$0xff]   ;;  %v2966_v30 = vld [vmem:[%s3809_s1 + $0xf8] sm:$0xff]   ;;  %1112 = vmatprep.mubr.bf16.mxu0 %v2969_v32  ;;  %v2971_v34 = vld [vmem:[%s3809_s1 + $0x140] sm:$0xff]  }
  0x43   : > { %2497 = vmatprep.subr.bf16.mxu0 %v2948_v12  ;;  %v2963_v27 = vld [vmem:[%s3809_s1 + $0xb0] sm:$0xff]   ;;  %v2967_v31 = vld [vmem:[%s3329_s13] ss:$28 sps:$4 sm:$0xff]   ;;  %v2972_v35 = vld [vmem:[%s3329_s13 + $0x8] ss:$28 sps:$4 sm:$0xff]  }
  0x44   : > { %2560 = vmatpush3.bf16.msra.mxu1 %v2947_v11  ;;  %v2970_v33 = vld [vmem:[%s3809_s1 + $0xb8] sm:$0xff]   ;;  %v2974_v36 = vld [vmem:[%s3329_s13 + $0xc] ss:$28 sps:$4 sm:$0xff]   ;;  %v2975_v37 = vld [vmem:[%s3809_s1 + $0x100] sm:$0xff]  }
  0x45   : > { %2561 = vmatprep.subr.bf16.mxu1 %v2950_v14  ;;  %1209 = vmatprep.mubr.bf16.mxu1 %v2974_v36  ;;  %v2976_v38 = vld [vmem:[%s3329_s13 + $0x3c] ss:$28 sps:$4 sm:$0xff]   ;;  %v2979_v40 = vld [vmem:[%s3809_s1 + $0x148] sm:$0xff]   ;;  %v2980_v41 = vld [vmem:[%s3329_s13 + $0x44] ss:$28 sps:$4 sm:$0xff]  }
  0x46   : > { %2498 = vmatpush3.bf16.msra.mxu0 %v2949_v13  ;;  %v2978_v39 = vld [vmem:[%s3329_s13 + $0x38] ss:$28 sps:$4 sm:$0xff]   ;;  %v2982_v42 = vld [vmem:[%s3809_s1 + $0x108] sm:$0xff]   ;;  %v2983_v43 = vld [vmem:[%s3329_s13 + $0x40] ss:$28 sps:$4 sm:$0xff]  }
  0x47   : > { %2499 = vmatprep.subr.bf16.mxu0 %v2952_v16  ;;  %v2984_v44 = vld [vmem:[%s3329_s13 + $0x74] ss:$28 sps:$4 sm:$0xff]   ;;  %v2988_v46 = vld [vmem:[%s3329_s13 + $0x7c] ss:$28 sps:$4 sm:$0xff]   ;;  %v2992_v49 = vld [vmem:[%s3329_s13 + $0xac] ss:$28 sps:$4 sm:$0xff]  }
  0x48   : > { %2562 = vmatpush3.bf16.msra.mxu1 %v2951_v15  ;;  %v2987_v45 = vld [vmem:[%s3809_s1 + $0x150] sm:$0xff]   ;;  %v2995_v50 = vld [vmem:[%s3809_s1 + $0x158] sm:$0xff]   ;;  %v3003_v54 = vld [vmem:[%s3809_s1 + $0x160] sm:$0xff]  }
  0x49   : > { %2563 = vmatprep.subr.bf16.mxu1 %v2954_v18  ;;  %v2990_v47 = vld [vmem:[%s3809_s1 + $0x110] sm:$0xff]   ;;  %v2998_v52 = vld [vmem:[%s3809_s1 + $0x118] sm:$0xff]   ;;  %v2994_v55 = vld [vmem:[%s3329_s13 + $0xa8] ss:$28 sps:$4 sm:$0xff]  }
  0x4a   : > { %2500 = vmatpush3.bf16.msra.mxu0 %v2953_v17  ;;  %v2986_v48 = vld [vmem:[%s3329_s13 + $0x70] ss:$28 sps:$4 sm:$0xff]   ;;  %v2991_v51 = vld [vmem:[%s3329_s13 + $0x78] ss:$28 sps:$4 sm:$0xff]   ;;  %v3006_v56 = vld [vmem:[%s3809_s1 + $0x120] sm:$0xff]  }
  0x4b   : > { %2501 = vmatprep.subr.bf16.mxu0 %v2956_v20  ;;  %v2996_v53 = vld [vmem:[%s3329_s13 + $0xb4] ss:$28 sps:$4 sm:$0xff]   ;;  %v3000_v57 = vld [vmem:[%s3329_s13 + $0xe4] ss:$28 sps:$4 sm:$0xff]   ;;  %v3004_v60 = vld [vmem:[%s3329_s13 + $0xec] ss:$28 sps:$4 sm:$0xff]  }
  0x4c   : > { %2564 = vmatpush3.bf16.msra.mxu1 %v2955_v19  ;;  %v3008_v58 = vld [vmem:[%s3809_s1 + $0x180] sm:$0xff]   ;;  %v2999_v59 = vld [vmem:[%s3329_s13 + $0xb0] ss:$28 sps:$4 sm:$0xff]   ;;  %v3009_v3 = vld [vmem:[%s3329_s13 + $0x11c] ss:$28 sps:$4 sm:$0xff]  }
  0x4d   : > { %2565 = vmatprep.subr.bf16.mxu1 %v2958_v22  ;;  %v3012_v61 = vld [vmem:[%s3809_s1 + $0x168] sm:$0xff]   ;;  %v3018_v0 = vld [vmem:[%s3809_s1 + $0x190] sm:$0xff]   ;;  %v3002_v1 = vld [vmem:[%s3329_s13 + $0xe0] ss:$28 sps:$4 sm:$0xff]  }
  0x4e   : > { %2502 = vmatpush3.bf16.msra.mxu0 %v2957_v21  ;;  %v3013_v62 = vld [vmem:[%s3809_s1 + $0x188] sm:$0xff]   ;;  %v3022_v4 = vld [vmem:[%s3809_s1 + $0x170] sm:$0xff]   ;;  %v3023_v5 = vld [vmem:[%s3809_s1 + $0x198] sm:$0xff]  }
  0x4f   : > { %2503 = vmatprep.subr.bf16.mxu0 %v2960_v24  ;;  %v3016_v63 = vld [vmem:[%s3809_s1 + $0x128] sm:$0xff]   ;;  %v3014_v6 = vld [vmem:[%s3329_s13 + $0x124] ss:$28 sps:$4 sm:$0xff]   ;;  %v3026_v7 = vld [vmem:[%s3809_s1 + $0x130] sm:$0xff]  }
  0x50   : > { %2566 = vmatpush3.bf16.msra.mxu1 %v2959_v23  ;;  %v3007_v2 = vld [vmem:[%s3329_s13 + $0xe8] ss:$28 sps:$4 sm:$0xff]   ;;  %v3011_v9 = vld [vmem:[%s3329_s13 + $0x118] ss:$28 sps:$4 sm:$0xff]   ;;  %v3017_v11 = vld [vmem:[%s3329_s13 + $0x120] ss:$28 sps:$4 sm:$0xff]  }
  0x51   : > { %2567 = vmatprep.subr.bf16.mxu1 %v2962_v26  ;;  %v3028_v8 = vld [vmem:[%s3809_s1 + $0x1a0] sm:$0xff]   ;;  %v3032_v10 = vld [vmem:[%s3809_s1 + $0x178] sm:$0xff]   ;;  %v3019_v12 = vld [vmem:[%s3329_s13 + $0x154] ss:$28 sps:$4 sm:$0xff]  }
  0x52   : > { %2504 = vmatpush3.bf16.msra.mxu0 %v2961_v25  ;;  %v3033_v13 = vld [vmem:[%s3809_s1 + $0x1a8] sm:$0xff]   ;;  %v3036_v14 = vld [vmem:[%s3809_s1 + $0x138] sm:$0xff]   ;;  %v3038_v16 = vld [vmem:[%s3809_s1 + $0x1b0] sm:$0xff]  }
  0x53   : > { %2505 = vmatprep.subr.bf16.mxu0 %v2964_v28  ;;  %v3024_v15 = vld [vmem:[%s3329_s13 + $0x15c] ss:$28 sps:$4 sm:$0xff]   ;;  %v3021_v17 = vld [vmem:[%s3329_s13 + $0x150] ss:$28 sps:$4 sm:$0xff]   ;;  %v3031_v22 = vld [vmem:[%s3329_s13 + $0x188] ss:$28 sps:$4 sm:$0xff]  }
  0x54   : > { %2568 = vmatpush3.bf16.msra.mxu1 %v2963_v27  ;;  %v3029_v18 = vld [vmem:[%s3329_s13 + $0x18c] ss:$28 sps:$4 sm:$0xff]   ;;  %v3042_v19 = vld [vmem:[%s3809_s1 + $0x1b8] sm:$0xff]   ;;  %v3034_v21 = vld [vmem:[%s3329_s13 + $0x194] ss:$28 sps:$4 sm:$0xff]  }
  0x55   : > { %2569 = vmatprep.subr.bf16.mxu1 %v2966_v30  ;;  %v3027_v20 = vld [vmem:[%s3329_s13 + $0x158] ss:$28 sps:$4 sm:$0xff]   ;;  %v3037_v24 = vld [vmem:[%s3329_s13 + $0x190] ss:$28 sps:$4 sm:$0xff]   ;;  %v3047_v30 = vld [vmem:[%s3329_s13 + $0x48] ss:$28 sps:$4 sm:$0xff]  }
  0x56   : > { %2506 = vmatpush3.bf16.msra.mxu0 %v2965_v29  ;;  %v3041_v23 = vld [vmem:[%s3329_s13 + $0x14] ss:$28 sps:$4 sm:$0xff]   ;;  %v3045_v27 = vld [vmem:[%s3329_s13 + $0x4c] ss:$28 sps:$4 sm:$0xff]   ;;  %v3052_v32 = vld [vmem:[%s3329_s13 + $0xc0] ss:$28 sps:$4 sm:$0xff]  }
  0x57   : > { %2619 = vmatprep.subr.bf16.mxu0 %v2971_v34  ;;  %v3043_v25 = vld [vmem:[%s3329_s13 + $0x18] ss:$28 sps:$4 sm:$0xff]   ;;  %v3039_v26 = vld [vmem:[%s3329_s13 + $0x10] ss:$28 sps:$4 sm:$0xff]   ;;  %v3051_v29 = vld [vmem:[%s3329_s13 + $0x88] ss:$28 sps:$4 sm:$0xff]  }
  0x58   : > { %2570 = vmatpush3.bf16.msra.mxu1 %v2970_v33  ;;  %v3044_v28 = vld [vmem:[%s3329_s13 + $0x50] ss:$28 sps:$4 sm:$0xff]   ;;  %v3059_v33 = vld [vmem:[%s3329_s13 + $0xf8] ss:$28 sps:$4 sm:$0xff]   ;;  %v3050_v34 = vld [vmem:[%s3329_s13 + $0x80] ss:$28 sps:$4 sm:$0xff]  }
  0x59   : > { %1113 = vmatmul.mubr.bf16.vlgmr.msra.gmra.mrb[0].mxu0 %v2967_v31  ;;  %2747 = vmatprep.subr.bf16.mxu1 %v3008_v58  ;;  %v3048_v31 = vld [vmem:[%s3329_s13 + $0x84] ss:$28 sps:$4 sm:$0xff]   ;;  %v3060_v36 = vld [vmem:[%s3329_s13 + $0x130] ss:$28 sps:$4 sm:$0xff]  }
  0x5a   : > { %2620 = vmatpush3.bf16.msra.mxu0 %v2975_v37  ;;  %1120 = vmatprep.mubr.bf16.mxu0 %v2976_v38  ;;  %v3067_v37 = vld [vmem:[%s3329_s13 + $0x168] ss:$28 sps:$4 sm:$0xff]   ;;  %v3055_v38 = vld [vmem:[%s3329_s13 + $0xb8] ss:$28 sps:$4 sm:$0xff]  }
  0x5b   : > { %1210 = vmatmul.mubr.bf16.vlgmr.msra.gmra.mrb[0].mxu1 %v2972_v35  ;;  %2621 = vmatprep.subr.bf16.mxu0 %v2979_v40  ;;  %v3053_v35 = vld [vmem:[%s3329_s13 + $0xbc] ss:$28 sps:$4 sm:$0xff]  }
  0x5c   : > { %1217 = vmatprep.mubr.bf16.mxu1 %v2980_v41  ;;  %2748 = vmatpush3.bf16.msra.mxu1 %v3008_v58  ;;  %v3068_v40 = vld [vmem:[%s3329_s13 + $0x1a0] ss:$28 sps:$4 sm:$0xff]   ;;  %v3058_v41 = vld [vmem:[%s3329_s13 + $0xf0] ss:$28 sps:$4 sm:$0xff]  }
  0x5d   : > { %2749 = vmatprep.subr.bf16.mxu1 %v3013_v62 }
  0x5e   : > { %2622 = vmatpush3.bf16.msra.mxu0 %v2982_v42  ;;  %v3061_v42 = vld [vmem:[%s3329_s13 + $0x12c] ss:$28 sps:$4 sm:$0xff]  }
  0x5f   : > { %2623 = vmatprep.subr.bf16.mxu0 %v2987_v45  ;;  %v3066_v45 = vld [vmem:[%s3329_s13 + $0x160] ss:$28 sps:$4 sm:$0xff]  }
  0x60   : > { %2750 = vmatpush3.bf16.msra.mxu1 %v3013_v62 }
  0x61   : > { %1121 = vmatmul.mubr.bf16.gmra.mrb[4].mxu0 %v2978_v39  ;;  %2751 = vmatprep.subr.bf16.mxu1 %v3018_v0  ;;  %v3056_v39 = vld [vmem:[%s3329_s13 + $0xf4] ss:$28 sps:$4 sm:$0xff]  }
  0x62   : > { %1128 = vmatprep.mubr.bf16.mxu0 %v2984_v44  ;;  %2624 = vmatpush3.bf16.msra.mxu0 %v2990_v47  ;;  %v3064_v44 = vld [vmem:[%s3329_s13 + $0x164] ss:$28 sps:$4 sm:$0xff]   ;;  %v3071_v47 = vld [vmem:[%s3329_s13 + $0x198] ss:$28 sps:$4 sm:$0xff]  }
  0x63   : > { %1218 = vmatmul.mubr.bf16.gmra.mrb[4].mxu1 %v2983_v43  ;;  %2625 = vmatprep.subr.bf16.mxu0 %v2995_v50  ;;  %v3063_v43 = vld [vmem:[%s3329_s13 + $0x128] ss:$28 sps:$4 sm:$0xff]   ;;  %v3074_v50 = vld [vmem:[%s3811_s3 + $0x10] sm:$0xff]  }
  0x64   : > { %1225 = vmatprep.mubr.bf16.mxu1 %v2988_v46  ;;  %2752 = vmatpush3.bf16.msra.mxu1 %v3018_v0  ;;  %v3069_v46 = vld [vmem:[%s3329_s13 + $0x19c] ss:$28 sps:$4 sm:$0xff]   ;;  %s2307_s13 = sshll.u32 %s3325_s28, 7 }
  0x65   : > { %2753 = vmatprep.subr.bf16.mxu1 %v3023_v5  ;;  %s3739_s19 = scalar_lea.vmem [#allocation5], %s2307_s13 }
  0x66   : > { %2626 = vmatpush3.bf16.msra.mxu0 %v2998_v52  ;;  %v452_v52 = vlaneseq  ;;  %s2227_s12 = sshll.u32 %s3739_s19, 4  ;;  %s3761_s12 = int_to_ptr.vmem [resolvable:$true] %s2227_s12 }
  0x67   : > { %2627 = vmatprep.subr.bf16.mxu0 %v3003_v54  ;;  %s3118_s20 = scalar_lea.vmem %s3761_s12, 2048  ;;  %p3125_p8 = scmp.lt.s32.totalorder %s3761_s12, %s3123_s29 }
  0x68   : > { %2754 = vmatpush3.bf16.msra.mxu1 %v3023_v5  ;;  %p3119_p6 = scmp.ne.s32.totalorder %s3761_s12, %s3118_s20  ;;  %p3126_p10 = scmp.lt.s32.totalorder %s3124_s11, %s3118_s20 }
  0x69   : > { %1129 = vmatmul.mubr.bf16.gmra.mrb[8].mxu0 %v2986_v48  ;;  %2755 = vmatprep.subr.bf16.mxu1 %v3028_v8  ;;  %v3072_v48 = vld [vmem:[%s3811_s3] sm:$0xff]  }
  0x6a   : > { %1136 = vmatprep.mubr.bf16.mxu0 %v2992_v49  ;;  %2628 = vmatpush3.bf16.msra.mxu0 %v3006_v56  ;;  %v3073_v49 = vld [vmem:[%s3811_s3 + $0x8] sm:$0xff]   ;;  %p3120_p12 = pnand %p3119_p6, %p3820_p11  ;;  %p3127_p0 = por %p3126_p10, %p3125_p8 }
  0x6b   : > { %1226 = vmatmul.mubr.bf16.gmra.mrb[8].mxu1 %v2991_v51  ;;  %2629 = vmatprep.subr.bf16.mxu0 %v3012_v61  ;;  %v3075_v51 = vld [vmem:[%s3811_s3 + $0x18] sm:$0xff]  }
  0x6c   : > { %1233 = vmatprep.mubr.bf16.mxu1 %v2996_v53  ;;  %2756 = vmatpush3.bf16.msra.mxu1 %v3028_v8  ;;  %v3571_v53 = vshrl.u32 %v452_v52, 7  ;;  %p3121_p13 = pneg %p3120_p12 }
  0x6d   : > { %2757 = vmatprep.subr.bf16.mxu1 %v3033_v13 }
  0x6e   : > { %2630 = vmatpush3.bf16.msra.mxu0 %v3016_v63  ;;  %v454_v54 = vsub.s32 0, %v3571_v53  ;;  %p3128_p2 = pnand %p3127_p0, %p3121_p13 }
  0x6f   : > { %2631 = vmatprep.subr.bf16.mxu0 %v3022_v4 }
  0x70   : > { %2758 = vmatpush3.bf16.msra.mxu1 %v3033_v13 }
  0x71   : > { %1137 = vmatmul.mubr.bf16.gmra.mrb[12].mxu0 %v2994_v55  ;;  %2759 = vmatprep.subr.bf16.mxu1 %v3038_v16  ;;  %v3577_v55 = vld [vmem:[%s3810_s2] sm:$0xf] }
  0x72   : > { %1144 = vmatprep.mubr.bf16.mxu0 %v3000_v57  ;;  %2632 = vmatpush3.bf16.msra.mxu0 %v3026_v7  ;;  %v3580_v57 = vrot.slane %v3577_v55, %v454_v54  ;;  %v3592_v7 = vld [vmem:[%s3811_s3 + $0x28] sm:$0xff]  }
  0x73   : > { %1234 = vmatmul.mubr.bf16.gmra.mrb[12].mxu1 %v2999_v59  ;;  %2633 = vmatprep.subr.bf16.mxu0 %v3032_v10 }
  0x74   : > { %1241 = vmatprep.mubr.bf16.mxu1 %v3004_v60  ;;  %2760 = vmatpush3.bf16.msra.mxu1 %v3038_v16 }
  0x75   : > { %2761 = vmatprep.subr.bf16.mxu1 %v3042_v19 }
  0x76   : > { %2634 = vmatpush3.bf16.msra.mxu0 %v3036_v14 }
  0x78   : > { %2762 = vmatpush3.bf16.msra.mxu1 %v3042_v19 }
  0x79   : > { %1145 = vmatmul.mubr.bf16.gmra.mrb[16].mxu0 %v3002_v1  ;;  %2779 = vmatprep.subr.bf16.mxu1 %v3072_v48 }
  0x7a   : > { %1152 = vmatprep.mubr.bf16.mxu0 %v3009_v3 }
  0x7b   : > { %1242 = vmatmul.mubr.bf16.gmra.mrb[16].mxu1 %v3007_v2 }
  0x7c   : > { %1249 = vmatprep.mubr.bf16.mxu1 %v3014_v6  ;;  %v3587_v6 = vld [vmem:[%s3811_s3 + $0x20] sm:$0xff]  }
  0x7d   : > { %2803 = vmatprep.subr.bf16.mxu0 %v3587_v6 }
  0x81   : > { %1153 = vmatmul.mubr.bf16.gmra.mrb[20].mxu0 %v3011_v9 }
  0x82   : > { %1160 = vmatprep.mubr.bf16.mxu0 %v3019_v12 }
  0x83   : > { %1250 = vmatmul.mubr.bf16.gmra.mrb[20].mxu1 %v3017_v11 }
  0x84   : > { %1257 = vmatprep.mubr.bf16.mxu1 %v3024_v15 }
  0x89   : > { %1161 = vmatmul.mubr.bf16.gmra.mrb[24].mxu0 %v3021_v17 }
  0x8a   : > { %1168 = vmatprep.mubr.bf16.mxu0 %v3029_v18 }
  0x8b   : > { %1258 = vmatmul.mubr.bf16.gmra.mrb[24].mxu1 %v3027_v20 }
  0x8c   : > { %1265 = vmatprep.mubr.bf16.mxu1 %v3034_v21 }
  0x91   : > { %1169 = vmatmul.mubr.bf16.gmra.mrb[28].mxu0 %v3031_v22 }
  0x92   : > { %1306 = vmatprep.mubr.bf16.mxu0 %v3041_v23 }
  0x93   : > { %1266 = vmatmul.mubr.bf16.gmra.mrb[28].mxu1 %v3037_v24 }
  0x94   : > { %2763 = vmatprep.mubr.bf16.mxu1 %v3043_v25 }
  0x99   : > { %1307 = vmatmul.mubr.bf16.vlgmr.msra.gmra.mrb[32].mxu0 %v3039_v26 }
  0x9a   : > { %1314 = vmatprep.mubr.bf16.mxu0 %v3045_v27  ;;  %2804 = vmatpush3.bf16.msra.mxu0 %v3587_v6 }
  0x9b   : > { %2764 = vmatmul.mubr.bf16.vlgmr.msra.gmra.mrb[32].mxu1 %v3044_v28  ;;  %2805 = vmatprep.subr.bf16.mxu0 %v3592_v7 }
  0x9c   : > { %2767 = vmatprep.mubr.bf16.mxu1 %v3051_v29  ;;  %2780 = vmatpush3.bf16.msra.mxu1 %v3072_v48 }
  0x9d   : > { %2781 = vmatprep.subr.bf16.mxu1 %v3073_v49 }
  0x9e   : > { %2806 = vmatpush3.bf16.msra.mxu0 %v3592_v7 }
  0xa0   : > { %2782 = vmatpush3.bf16.msra.mxu1 %v3073_v49 }
  0xa1   : > { %1315 = vmatmul.mubr.bf16.gmra.mrb[36].mxu0 %v3047_v30  ;;  %2783 = vmatprep.subr.bf16.mxu1 %v3074_v50 }
  0xa2   : > { %1322 = vmatprep.mubr.bf16.mxu0 %v3048_v31 }
  0xa3   : > { %2768 = vmatmul.mubr.bf16.gmra.mrb[36].mxu1 %v3052_v32 }
  0xa4   : > { %2771 = vmatprep.mubr.bf16.mxu1 %v3059_v33  ;;  %2784 = vmatpush3.bf16.msra.mxu1 %v3074_v50 }
  0xa5   : > { %2785 = vmatprep.subr.bf16.mxu1 %v3075_v51 }
  0xa8   : > { %2786 = vmatpush3.bf16.msra.mxu1 %v3075_v51 }
  0xa9   : > { %1323 = vmatmul.mubr.bf16.gmra.mrb[40].mxu0 %v3050_v34  ;;  %2875 = vmatprep.subr.bf16.mxu1 %v3587_v6 }
  0xaa   : > { %1330 = vmatprep.mubr.bf16.mxu0 %v3053_v35 }
  0xab   : > { %2772 = vmatmul.mubr.bf16.gmra.mrb[40].mxu1 %v3060_v36 }
  0xac   : > { %2775 = vmatprep.mubr.bf16.mxu1 %v3067_v37 }
  0xb1   : > { %1331 = vmatmul.mubr.bf16.gmra.mrb[44].mxu0 %v3055_v38 }
  0xb2   : > { %1338 = vmatprep.mubr.bf16.mxu0 %v3056_v39 }
  0xb3   : > { %2776 = vmatmul.mubr.bf16.gmra.mrb[44].mxu1 %v3068_v40 }
  0xb9   : > { %1339 = vmatmul.mubr.bf16.gmra.mrb[48].mxu0 %v3058_v41 }
  0xba   : > { %1346 = vmatprep.mubr.bf16.mxu0 %v3061_v42 }
  0xc1   : > { %1347 = vmatmul.mubr.bf16.gmra.mrb[52].mxu0 %v3063_v43 }
  0xc2   : > { %1354 = vmatprep.mubr.bf16.mxu0 %v3064_v44 }
  0xc9   : > { %1355 = vmatmul.mubr.bf16.gmra.mrb[56].mxu0 %v3066_v45 }
  0xca   : > { %1362 = vmatprep.mubr.bf16.mxu0 %v3069_v46 }
  0xd1   : > { %1363 = vmatmul.mubr.bf16.gmra.mrb[60].mxu0 %v3071_v47 }
 0x12c   : > { %v2507_v56 = vpop.f32.mrb[0].mxu0 }
 0x12d   : > { %v2508_v58 = vpop.f32.mrb[1].mxu0 }
 0x12e   : > { %v2509_v59 = vadd.f32 %v2508_v58, %v2507_v56  ;;  %v2510_v60 = vpop.f32.mrb[2].mxu0  ;;  %v2571_v61 = vpop.f32.mrb[0].mxu1 }
 0x12f   : > { %v2511_v62 = vpop.f32.mrb[3].mxu0  ;;  %v2572_v1 = vpop.f32.mrb[1].mxu1 }
 0x130   : > { %v1115_v63 = vadd.f32 %v2509_v59, %v3580_v57  ;;  %v2512_v0 = vadd.f32 %v2511_v62, %v2510_v60  ;;  %v2573_v2 = vadd.f32 %v2572_v1, %v2571_v61  ;;  %v2574_v3 = vpop.f32.mrb[2].mxu1 }
 0x131   : > { %v2575_v5 = vpop.f32.mrb[3].mxu1 }
 0x132   : > { %v1118_v4 = vadd.f32 %v2512_v0, %v3580_v57  ;;  %v3594_v8 = vadd.f32 %v2573_v2, %v1115_v63  ;;  %v2576_v9 = vadd.f32 %v2575_v5, %v2574_v3 }
 0x134   : > { %v2513_v10 = vpop.f32.mrb[4].mxu0  ;;  %v3598_v11 = vadd.f32 %v2576_v9, %v1118_v4 }
 0x135   : > { %v2514_v12 = vpop.f32.mrb[5].mxu0 }
 0x136   : > { %v2515_v13 = vadd.f32 %v2514_v12, %v2513_v10  ;;  %v2516_v14 = vpop.f32.mrb[6].mxu0  ;;  %v2577_v15 = vpop.f32.mrb[4].mxu1 }
 0x137   : > { %v2517_v16 = vpop.f32.mrb[7].mxu0  ;;  %v2578_v19 = vpop.f32.mrb[5].mxu1 }
 0x138   : > { %v1123_v17 = vadd.f32 %v2515_v13, %v3580_v57  ;;  %v2518_v18 = vadd.f32 %v2517_v16, %v2516_v14  ;;  %v2579_v20 = vadd.f32 %v2578_v19, %v2577_v15  ;;  %v2580_v21 = vpop.f32.mrb[6].mxu1 }
 0x139   : > { %v2581_v23 = vpop.f32.mrb[7].mxu1 }
 0x13a   : > { %v1126_v22 = vadd.f32 %v2518_v18, %v3580_v57  ;;  %v3605_v24 = vadd.f32 %v2579_v20, %v1123_v17  ;;  %v2582_v25 = vadd.f32 %v2581_v23, %v2580_v21 }
 0x13c   : > { %v2519_v26 = vpop.f32.mrb[8].mxu0  ;;  %v3607_v27 = vadd.f32 %v2582_v25, %v1126_v22 }
 0x13d   : > { %v2520_v28 = vpop.f32.mrb[9].mxu0 }
 0x13e   : > { %v2521_v29 = vadd.f32 %v2520_v28, %v2519_v26  ;;  %v2522_v30 = vpop.f32.mrb[10].mxu0  ;;  %v2583_v31 = vpop.f32.mrb[8].mxu1 }
 0x13f   : > { %v2523_v32 = vpop.f32.mrb[11].mxu0  ;;  %v2584_v35 = vpop.f32.mrb[9].mxu1 }
 0x140   : > { %v1131_v33 = vadd.f32 %v2521_v29, %v3580_v57  ;;  %v2524_v34 = vadd.f32 %v2523_v32, %v2522_v30  ;;  %v2585_v36 = vadd.f32 %v2584_v35, %v2583_v31  ;;  %v2586_v37 = vpop.f32.mrb[10].mxu1 }
 0x141   : > { %v2587_v39 = vpop.f32.mrb[11].mxu1 }
 0x142   : > { %v1134_v38 = vadd.f32 %v2524_v34, %v3580_v57  ;;  %v3611_v40 = vadd.f32 %v2585_v36, %v1131_v33  ;;  %v2588_v41 = vadd.f32 %v2587_v39, %v2586_v37 }
 0x144   : > { %v2525_v42 = vpop.f32.mrb[12].mxu0  ;;  %v3613_v43 = vadd.f32 %v2588_v41, %v1134_v38 }
 0x145   : > { %v2526_v44 = vpop.f32.mrb[13].mxu0 }
 0x146   : > { %v2527_v45 = vadd.f32 %v2526_v44, %v2525_v42  ;;  %v2528_v46 = vpop.f32.mrb[14].mxu0  ;;  %v2589_v47 = vpop.f32.mrb[12].mxu1 }
 0x147   : > { %v2529_v48 = vpop.f32.mrb[15].mxu0  ;;  %v2590_v51 = vpop.f32.mrb[13].mxu1 }
 0x148   : > { %v1139_v49 = vadd.f32 %v2527_v45, %v3580_v57  ;;  %v2530_v50 = vadd.f32 %v2529_v48, %v2528_v46  ;;  %v2591_v52 = vadd.f32 %v2590_v51, %v2589_v47  ;;  %v2592_v54 = vpop.f32.mrb[14].mxu1 }
 0x149   : > { %v2593_v58 = vpop.f32.mrb[15].mxu1 }
 0x14a   : > { %v1142_v56 = vadd.f32 %v2530_v50, %v3580_v57  ;;  %v3617_v59 = vadd.f32 %v2591_v52, %v1139_v49  ;;  %v2594_v60 = vadd.f32 %v2593_v58, %v2592_v54 }
 0x14c   : > { %v2531_v61 = vpop.f32.mrb[16].mxu0  ;;  %v3619_v62 = vadd.f32 %v2594_v60, %v1142_v56 }
 0x14d   : > { %v2532_v63 = vpop.f32.mrb[17].mxu0 }
 0x14e   : > { %v2533_v0 = vadd.f32 %v2532_v63, %v2531_v61  ;;  %v2534_v1 = vpop.f32.mrb[18].mxu0  ;;  %v2595_v2 = vpop.f32.mrb[16].mxu1 }
 0x14f   : > { %v2535_v3 = vpop.f32.mrb[19].mxu0  ;;  %v2596_v9 = vpop.f32.mrb[17].mxu1 }
 0x150   : > { %v1147_v4 = vadd.f32 %v2533_v0, %v3580_v57  ;;  %v2536_v5 = vadd.f32 %v2535_v3, %v2534_v1  ;;  %v2597_v10 = vadd.f32 %v2596_v9, %v2595_v2  ;;  %v2598_v12 = vpop.f32.mrb[18].mxu1 }
 0x151   : > { %v2599_v14 = vpop.f32.mrb[19].mxu1 }
 0x152   : > { %v1150_v13 = vadd.f32 %v2536_v5, %v3580_v57  ;;  %v3623_v15 = vadd.f32 %v2597_v10, %v1147_v4  ;;  %v2600_v16 = vadd.f32 %v2599_v14, %v2598_v12 }
 0x154   : > { %v2537_v17 = vpop.f32.mrb[20].mxu0  ;;  %v3625_v18 = vadd.f32 %v2600_v16, %v1150_v13 }
 0x155   : > { %v2538_v19 = vpop.f32.mrb[21].mxu0 }
 0x156   : > { %v2539_v20 = vadd.f32 %v2538_v19, %v2537_v17  ;;  %v2540_v21 = vpop.f32.mrb[22].mxu0  ;;  %v2601_v22 = vpop.f32.mrb[20].mxu1 }
 0x157   : > { %v2541_v23 = vpop.f32.mrb[23].mxu0  ;;  %v2602_v28 = vpop.f32.mrb[21].mxu1 }
 0x158   : > { %v1155_v25 = vadd.f32 %v2539_v20, %v3580_v57  ;;  %v2542_v26 = vadd.f32 %v2541_v23, %v2540_v21  ;;  %v2603_v29 = vadd.f32 %v2602_v28, %v2601_v22  ;;  %v2604_v30 = vpop.f32.mrb[22].mxu1 }
 0x159   : > { %v2605_v32 = vpop.f32.mrb[23].mxu1 }
 0x15a   : > { %v1158_v31 = vadd.f32 %v2542_v26, %v3580_v57  ;;  %v3629_v33 = vadd.f32 %v2603_v29, %v1155_v25  ;;  %v2606_v34 = vadd.f32 %v2605_v32, %v2604_v30 }
 0x15c   : > { %v2543_v35 = vpop.f32.mrb[24].mxu0  ;;  %v3631_v36 = vadd.f32 %v2606_v34, %v1158_v31 }
 0x15d   : > { %v2544_v37 = vpop.f32.mrb[25].mxu0 }
 0x15e   : > { %v2545_v38 = vadd.f32 %v2544_v37, %v2543_v35  ;;  %v2546_v39 = vpop.f32.mrb[26].mxu0  ;;  %v2607_v41 = vpop.f32.mrb[24].mxu1 }
 0x15f   : > { %v2547_v42 = vpop.f32.mrb[27].mxu0  ;;  %v2608_v46 = vpop.f32.mrb[25].mxu1 }
 0x160   : > { %v1163_v44 = vadd.f32 %v2545_v38, %v3580_v57  ;;  %v2548_v45 = vadd.f32 %v2547_v42, %v2546_v39  ;;  %v2609_v47 = vadd.f32 %v2608_v46, %v2607_v41  ;;  %v2610_v48 = vpop.f32.mrb[26].mxu1 }
 0x161   : > { %v2611_v50 = vpop.f32.mrb[27].mxu1 }
 0x162   : > { %v1166_v49 = vadd.f32 %v2548_v45, %v3580_v57  ;;  %v3635_v51 = vadd.f32 %v2609_v47, %v1163_v44  ;;  %v2612_v52 = vadd.f32 %v2611_v50, %v2610_v48 }
 0x164   : > { %v2549_v54 = vpop.f32.mrb[28].mxu0  ;;  %v3637_v56 = vadd.f32 %v2612_v52, %v1166_v49 }
 0x165   : > { %v2550_v58 = vpop.f32.mrb[29].mxu0 }
 0x166   : > { %v2551_v60 = vadd.f32 %v2550_v58, %v2549_v54  ;;  %v2552_v61 = vpop.f32.mrb[30].mxu0  ;;  %v2613_v63 = vpop.f32.mrb[28].mxu1 }
 0x167   : > { %v2553_v0 = vpop.f32.mrb[31].mxu0  ;;  %v2614_v3 = vpop.f32.mrb[29].mxu1 }
 0x168   : > { %v1171_v1 = vadd.f32 %v2551_v60, %v3580_v57  ;;  %v2554_v2 = vadd.f32 %v2553_v0, %v2552_v61  ;;  %v2615_v4 = vadd.f32 %v2614_v3, %v2613_v63  ;;  %v2616_v5 = vpop.f32.mrb[30].mxu1 }
 0x169   : > { %v2617_v10 = vpop.f32.mrb[31].mxu1 }
 0x16a   : > { %v1174_v9 = vadd.f32 %v2554_v2, %v3580_v57  ;;  %v3641_v12 = vadd.f32 %v2615_v4, %v1171_v1  ;;  %v2618_v13 = vadd.f32 %v2617_v10, %v2616_v5 }
 0x16c   : > { %v2635_v14 = vpop.f32.mrb[32].mxu0  ;;  %v3643_v16 = vadd.f32 %v2618_v13, %v1174_v9 }
 0x16d   : > { %v2636_v17 = vpop.f32.mrb[33].mxu0 }
 0x16e   : > { %v2637_v19 = vadd.f32 %v2636_v17, %v2635_v14  ;;  %v2638_v20 = vpop.f32.mrb[34].mxu0  ;;  %v2765_v22 = vpop.f32.mrb[32].mxu1 }
 0x16f   : > { %v2639_v21 = vpop.f32.mrb[35].mxu0  ;;  %v1405_v26 = vpop.f32.mrb[33].mxu1 }
 0x170   : > { %v2640_v23 = vadd.f32 %v2639_v21, %v2638_v20  ;;  %v1309_v25 = vadd.f32 %v2637_v19, %v3594_v8  ;;  %v2766_v28 = vpop.f32.mrb[34].mxu1 }
 0x171   : > { %v1408_v30 = vpop.f32.mrb[35].mxu1 }
 0x172   : > { %v1406_v29 = vadd.f32 %v1405_v26, %v1309_v25  ;;  %v1312_v57 = vadd.f32 %v2640_v23, %v3598_v11 }
 0x174   : > { %v1409_v31 = vadd.f32 %v1408_v30, %v1312_v57  ;;  %v2641_v32 = vpop.f32.mrb[36].mxu0  ;;  %v1468_v35 = vmax.f32 %v1406_v29, 0.0 }
 0x175   : > { %v2642_v34 = vpop.f32.mrb[37].mxu0 }
 0x176   : > { %v1469_v37 = vmax.f32 %v1409_v31, 0.0  ;;  %v2643_v38 = vadd.f32 %v2642_v34, %v2641_v32  ;;  %v2644_v39 = vpop.f32.mrb[38].mxu0  ;;  %v2769_v42 = vpop.f32.mrb[36].mxu1 }
 0x177   : > { %v2645_v41 = vpop.f32.mrb[39].mxu0  ;;  %v1421_v46 = vpop.f32.mrb[37].mxu1 }
 0x178   : > { %v1484_v44 = vpack.c.bf16 %v1469_v37, %v1468_v35  ;;  %v1317_v45 = vadd.f32 %v2643_v38, %v3605_v24  ;;  %v2646_v8 = vadd.f32 %v2645_v41, %v2644_v39  ;;  %v2770_v47 = vpop.f32.mrb[38].mxu1 }
 0x179   : > { %v1424_v49 = vpop.f32.mrb[39].mxu1 }
 0x17a   : > { %v1414_v48 = vadd.f32 %v2765_v22, %v1317_v45  ;;  %v1320_v11 = vadd.f32 %v2646_v8, %v3607_v27  ;;  %2787 = vmatprep.mubr.msk.bf16.mxu1 %vm1528_vm0, %v1484_v44 }
 0x17c   : > { %v1417_v50 = vadd.f32 %v2766_v28, %v1320_v11  ;;  %v2647_v52 = vpop.f32.mrb[40].mxu0  ;;  %v1470_v58 = vmax.f32 %v1414_v48, 0.0 }
 0x17d   : > { %v2648_v54 = vpop.f32.mrb[41].mxu0 }
 0x17e   : > { %v1471_v60 = vmax.f32 %v1417_v50, 0.0  ;;  %v2649_v61 = vadd.f32 %v2648_v54, %v2647_v52  ;;  %v2650_v63 = vpop.f32.mrb[42].mxu0  ;;  %v2773_v1 = vpop.f32.mrb[40].mxu1 }
 0x17f   : > { %v2651_v0 = vpop.f32.mrb[43].mxu0  ;;  %v1437_v4 = vpop.f32.mrb[41].mxu1 }
 0x180   : > { %v1485_v2 = vpack.c.bf16 %v1471_v60, %v1470_v58  ;;  %v2652_v24 = vadd.f32 %v2651_v0, %v2650_v63  ;;  %v1325_v3 = vadd.f32 %v2649_v61, %v3611_v40  ;;  %v2774_v5 = vpop.f32.mrb[42].mxu1 }
 0x181   : > { %v1440_v10 = vpop.f32.mrb[43].mxu1 }
 0x182   : > { %v1422_v9 = vadd.f32 %v1421_v46, %v1325_v3  ;;  %2788 = vmatmul.mubr.msk.bf16.vlgmr.msra.gmra.mrb[48].mxu1 %vm1528_vm0, %v1485_v2  ;;  %v1328_v27 = vadd.f32 %v2652_v24, %v3613_v43 }
 0x183   : > { %2879 = vmatpush3.bf16.msra.mxu1 %v3587_v6 }
 0x184   : > { %v1425_v13 = vadd.f32 %v1424_v49, %v1328_v27  ;;  %v2653_v14 = vpop.f32.mrb[44].mxu0  ;;  %2876 = vmatprep.subr.bf16.mxu1 %v3592_v7  ;;  %v1472_v19 = vmax.f32 %v1422_v9, 0.0 }
 0x185   : > { %v2654_v17 = vpop.f32.mrb[45].mxu0 }
 0x186   : > { %v1473_v20 = vmax.f32 %v1425_v13, 0.0  ;;  %v2655_v21 = vadd.f32 %v2654_v17, %v2653_v14  ;;  %v2656_v22 = vpop.f32.mrb[46].mxu0  ;;  %v3655_v23 = vpop.f32.mrb[44].mxu1 }
 0x187   : > { %v2657_v40 = vpop.f32.mrb[47].mxu0  ;;  %2880 = vmatpush3.bf16.msra.mxu1 %v3592_v7  ;;  %v1453_v28 = vpop.f32.mrb[45].mxu1 }
 0x188   : > { %v1486_v25 = vpack.c.bf16 %v1473_v20, %v1472_v19  ;;  %v1333_v43 = vadd.f32 %v2655_v21, %v3617_v59  ;;  %v2658_v26 = vadd.f32 %v2657_v40, %v2656_v22  ;;  %v2778_v6 = vpop.f32.mrb[46].mxu1 }
 0x189   : > { %v1456_v30 = vpop.f32.mrb[47].mxu1 }
 0x18a   : > { %v1430_v29 = vadd.f32 %v2769_v42, %v1333_v43  ;;  %v1336_v57 = vadd.f32 %v2658_v26, %v3619_v62  ;;  %2791 = vmatprep.mubr.msk.bf16.mxu1 %vm1528_vm0, %v1486_v25 }
 0x18c   : > { %v1433_v31 = vadd.f32 %v2770_v47, %v1336_v57  ;;  %v2659_v32 = vpop.f32.mrb[48].mxu0  ;;  %v1474_v35 = vmax.f32 %v1430_v29, 0.0  ;;  %v3078_v57 = vld [vmem:[%s3811_s3 + $0x30] sm:$0xff]  }
 0x18d   : > { %v2660_v34 = vpop.f32.mrb[49].mxu0  ;;  %2807 = vmatprep.subr.bf16.mxu0 %v3078_v57  ;;  %2877 = vmatprep.subr.bf16.mxu1 %v3078_v57 }
 0x18e   : > { %v1475_v37 = vmax.f32 %v1433_v31, 0.0  ;;  %v2661_v38 = vadd.f32 %v2660_v34, %v2659_v32  ;;  %v2662_v39 = vpop.f32.mrb[50].mxu0  ;;  %2808 = vmatpush3.bf16.msra.mxu0 %v3078_v57  ;;  %2881 = vmatpush3.bf16.msra.mxu1 %v3078_v57  ;;  %v3082_v57 = vld [vmem:[%s3811_s3 + $0x50] sm:$0xff]  }
 0x18f   : > { %v2663_v7 = vpop.f32.mrb[51].mxu0 }
 0x190   : > { %v1487_v41 = vpack.c.bf16 %v1475_v37, %v1474_v35  ;;  %v2664_v44 = vadd.f32 %v2663_v7, %v2662_v39  ;;  %v1341_v59 = vadd.f32 %v2661_v38, %v3623_v15 }
 0x192   : > { %v1438_v45 = vadd.f32 %v1437_v4, %v1341_v59  ;;  %2792 = vmatmul.mubr.msk.bf16.gmra.mrb[52].mxu1 %vm1528_vm0, %v1487_v41  ;;  %v1344_v62 = vadd.f32 %v2664_v44, %v3625_v18 }
 0x194   : > { %v1441_v42 = vadd.f32 %v1440_v10, %v1344_v62  ;;  %v2665_v8 = vpop.f32.mrb[52].mxu0  ;;  %v1476_v47 = vmax.f32 %v1438_v45, 0.0 }
 0x195   : > { %v2666_v46 = vpop.f32.mrb[53].mxu0 }
 0x196   : > { %v1477_v48 = vmax.f32 %v1441_v42, 0.0  ;;  %v2667_v11 = vadd.f32 %v2666_v46, %v2665_v8  ;;  %v2668_v49 = vpop.f32.mrb[54].mxu0 }
 0x197   : > { %v2669_v50 = vpop.f32.mrb[55].mxu0 }
 0x198   : > { %v1488_v52 = vpack.c.bf16 %v1477_v48, %v1476_v47  ;;  %v1349_v54 = vadd.f32 %v2667_v11, %v3629_v33  ;;  %v2670_v58 = vadd.f32 %v2669_v50, %v2668_v49 }
 0x19a   : > { %v1446_v60 = vadd.f32 %v2773_v1, %v1349_v54  ;;  %v1352_v15 = vadd.f32 %v2670_v58, %v3631_v36  ;;  %2795 = vmatprep.mubr.msk.bf16.mxu1 %vm1528_vm0, %v1488_v52 }
 0x19c   : > { %v1449_v61 = vadd.f32 %v2774_v5, %v1352_v15  ;;  %v2671_v63 = vpop.f32.mrb[56].mxu0  ;;  %v1478_v0 = vmax.f32 %v1446_v60, 0.0 }
 0x19d   : > { %v2672_v18 = vpop.f32.mrb[57].mxu0 }
 0x19e   : > { %v1479_v2 = vmax.f32 %v1449_v61, 0.0  ;;  %v2673_v24 = vadd.f32 %v2672_v18, %v2671_v63  ;;  %v2674_v3 = vpop.f32.mrb[58].mxu0 }
 0x19f   : > { %v2675_v4 = vpop.f32.mrb[59].mxu0 }
 0x1a0   : > { %v1489_v9 = vpack.c.bf16 %v1479_v2, %v1478_v0  ;;  %v2676_v27 = vadd.f32 %v2675_v4, %v2674_v3  ;;  %v1357_v10 = vadd.f32 %v2673_v24, %v3635_v51 }
 0x1a2   : > { %v1454_v13 = vadd.f32 %v1453_v28, %v1357_v10  ;;  %2796 = vmatmul.mubr.msk.bf16.gmra.mrb[56].mxu1 %vm1528_vm0, %v1489_v9  ;;  %v1360_v33 = vadd.f32 %v2676_v27, %v3637_v56 }
 0x1a4   : > { %v1457_v36 = vadd.f32 %v1456_v30, %v1360_v33  ;;  %v2677_v1 = vpop.f32.mrb[60].mxu0  ;;  %v1480_v5 = vmax.f32 %v1454_v13, 0.0 }
 0x1a5   : > { %v2678_v14 = vpop.f32.mrb[61].mxu0 }
 0x1a6   : > { %v1481_v17 = vmax.f32 %v1457_v36, 0.0  ;;  %v2679_v19 = vadd.f32 %v2678_v14, %v2677_v1  ;;  %v2680_v20 = vpop.f32.mrb[62].mxu0  ;;  %v3081_v14 = vld [vmem:[%s3811_s3 + $0x48] sm:$0xff]  }
 0x1a7   : > { %v2681_v21 = vpop.f32.mrb[63].mxu0 }
 0x1a8   : > { %v1490_v22 = vpack.c.bf16 %v1481_v17, %v1480_v5  ;;  %v1365_v40 = vadd.f32 %v2679_v19, %v3641_v12  ;;  %v2682_v25 = vadd.f32 %v2681_v21, %v2680_v20  ;;  %v3079_v12 = vld [vmem:[%s3811_s3 + $0x38] sm:$0xff]  }
 0x1a9   : > { %2809 = vmatprep.subr.bf16.mxu0 %v3079_v12  ;;  %2878 = vmatprep.subr.bf16.mxu1 %v3079_v12 }
 0x1aa   : > { %v1462_v43 = vadd.f32 %v3655_v23, %v1365_v40  ;;  %v1368_v51 = vadd.f32 %v2682_v25, %v3643_v16  ;;  %2799 = vmatprep.mubr.msk.bf16.mxu1 %vm1528_vm0, %v1490_v22  ;;  %2810 = vmatpush3.bf16.msra.mxu0 %v3079_v12  ;;  %v3080_v16 = vld [vmem:[%s3811_s3 + $0x40] sm:$0xff]   ;;  %v1502_v23 = vsub.s32 1, %v3571_v53 }
 0x1ab   : > { %2882 = vmatpush3.bf16.msra.mxu1 %v3079_v12  ;;  %v3083_v12 = vld [vmem:[%s3811_s3 + $0x58] sm:$0xff]  }
 0x1ac   : > { %v1465_v26 = vadd.f32 %v2778_v6, %v1368_v51  ;;  %v1482_v56 = vmax.f32 %v1462_v43, 0.0  ;;  %2827 = vmatprep.subr.bf16.mxu1 %v3080_v16  ;;  %v1503_v6 = vrot.slane %v3577_v55, %v1502_v23  ;;  %v3085_v23 = vld [vmem:[%s3812_s4 + $0x8] sm:$0xff]  }
 0x1ae   : > { %v1483_v28 = vmax.f32 %v1465_v26, 0.0 }
 0x1b0   : > { %v1491_v29 = vpack.c.bf16 %v1483_v28, %v1482_v56 }
 0x1b2   : > { %2800 = vmatmul.mubr.msk.bf16.gmra.mrb[60].mxu1 %vm1528_vm0, %v1491_v29 }
 0x255   : > { %v2789_v30 = vpop.f32.mrb[48].mxu1 }
 0x256   : > { %v1596_v31 = vadd.f32 %v2789_v30, %v1503_v6  ;;  %v1587_v32 = vpop.f32.mrb[49].mxu1 }
 0x257   : > { %v1588_v34 = vadd.f32 %v1587_v32, %v1503_v6  ;;  %v2790_v35 = vpop.f32.mrb[50].mxu1 }
 0x258   : > { %v1599_v37 = vadd.f32 %v2790_v35, %v1503_v6  ;;  %v1590_v38 = vpop.f32.mrb[51].mxu1  ;;  %v1652_v7 = vmax.f32 %v1596_v31, 0.0 }
 0x259   : > { %v1591_v39 = vadd.f32 %v1590_v38, %v1503_v6  ;;  %v1650_v44 = vmax.f32 %v1588_v34, 0.0 }
 0x25a   : > { %v1653_v41 = vmax.f32 %v1599_v37, 0.0 }
 0x25b   : > { %v1651_v59 = vmax.f32 %v1591_v39, 0.0 }
 0x25c   : > { %v1667_v45 = vpack.c.bf16 %v1653_v41, %v1652_v7 }
 0x25d   : > { %v1666_v62 = vpack.c.bf16 %v1651_v59, %v1650_v44 }
 0x25f   : > { %2811 = vmatprep.mubr.msk.bf16.mxu0 %vm1528_vm0, %v1666_v62 }
 0x260   : > { %2812 = vmatmul.mubr.msk.bf16.vlgmr.msra.gmra.mrb[64].mxu0 %vm1528_vm0, %v1667_v45 }
 0x265   : > { %v2793_v42 = vpop.f32.mrb[52].mxu1 }
 0x266   : > { %v1612_v8 = vadd.f32 %v2793_v42, %v1503_v6  ;;  %v1603_v46 = vpop.f32.mrb[53].mxu1 }
 0x267   : > { %v1604_v47 = vadd.f32 %v1603_v46, %v1503_v6  ;;  %v2794_v48 = vpop.f32.mrb[54].mxu1 }
 0x268   : > { %v1615_v11 = vadd.f32 %v2794_v48, %v1503_v6  ;;  %v1606_v49 = vpop.f32.mrb[55].mxu1  ;;  %v1656_v52 = vmax.f32 %v1612_v8, 0.0 }
 0x269   : > { %v1607_v50 = vadd.f32 %v1606_v49, %v1503_v6  ;;  %v1654_v58 = vmax.f32 %v1604_v47, 0.0 }
 0x26a   : > { %v1657_v54 = vmax.f32 %v1615_v11, 0.0 }
 0x26b   : > { %v1655_v60 = vmax.f32 %v1607_v50, 0.0 }
 0x26c   : > { %v1669_v15 = vpack.c.bf16 %v1657_v54, %v1656_v52 }
 0x26d   : > { %v1668_v61 = vpack.c.bf16 %v1655_v60, %v1654_v58 }
 0x26f   : > { %2815 = vmatprep.mubr.msk.bf16.mxu0 %vm1528_vm0, %v1668_v61 }
 0x270   : > { %2816 = vmatmul.mubr.msk.bf16.gmra.mrb[68].mxu0 %vm1528_vm0, %v1669_v15 }
 0x275   : > { %v2797_v63 = vpop.f32.mrb[56].mxu1 }
 0x276   : > { %v1628_v18 = vadd.f32 %v2797_v63, %v1503_v6  ;;  %v1619_v0 = vpop.f32.mrb[57].mxu1 }
 0x277   : > { %v1620_v2 = vadd.f32 %v1619_v0, %v1503_v6  ;;  %v2798_v24 = vpop.f32.mrb[58].mxu1 }
 0x278   : > { %v1631_v3 = vadd.f32 %v2798_v24, %v1503_v6  ;;  %v1622_v4 = vpop.f32.mrb[59].mxu1  ;;  %v1660_v27 = vmax.f32 %v1628_v18, 0.0 }
 0x279   : > { %v1623_v9 = vadd.f32 %v1622_v4, %v1503_v6  ;;  %v1658_v13 = vmax.f32 %v1620_v2, 0.0 }
 0x27a   : > { %v1661_v10 = vmax.f32 %v1631_v3, 0.0 }
 0x27b   : > { %v1659_v33 = vmax.f32 %v1623_v9, 0.0 }
 0x27c   : > { %v1671_v36 = vpack.c.bf16 %v1661_v10, %v1660_v27 }
 0x27d   : > { %v1670_v1 = vpack.c.bf16 %v1659_v33, %v1658_v13 }
 0x27f   : > { %2819 = vmatprep.mubr.msk.bf16.mxu1 %vm1528_vm0, %v1670_v1 }
 0x280   : > { %2820 = vmatmul.mubr.msk.bf16.vlgmr.msra.gmra.mrb[64].mxu1 %vm1528_vm0, %v1671_v36 }
 0x281   : > { %2828 = vmatpush3.bf16.msra.mxu1 %v3080_v16  ;;  %v3084_v16 = vld [vmem:[%s3812_s4] sm:$0xff]  }
 0x282   : > { %2829 = vmatprep.subr.bf16.mxu1 %v3081_v14  ;;  %2851 = vmatprep.subr.bf16.mxu0 %v3084_v16 }
 0x283   : > { %2852 = vmatpush3.bf16.msra.mxu0 %v3084_v16  ;;  %v1867_v16 = vsub.s32 3, %v3571_v53 }
 0x284   : > { %2853 = vmatprep.subr.bf16.mxu0 %v3085_v23 }
 0x285   : > { %v2801_v5 = vpop.f32.mrb[60].mxu1  ;;  %2830 = vmatpush3.bf16.msra.mxu1 %v3081_v14 }
 0x286   : > { %v1644_v17 = vadd.f32 %v2801_v5, %v1503_v6  ;;  %v1635_v19 = vpop.f32.mrb[61].mxu1  ;;  %2831 = vmatprep.subr.bf16.mxu1 %v3082_v57 }
 0x287   : > { %v1636_v20 = vadd.f32 %v1635_v19, %v1503_v6  ;;  %v2802_v21 = vpop.f32.mrb[62].mxu1  ;;  %2854 = vmatpush3.bf16.msra.mxu0 %v3085_v23  ;;  %v1868_v23 = vrot.slane %v3577_v55, %v1867_v16 }
 0x288   : > { %v1647_v22 = vadd.f32 %v2802_v21, %v1503_v6  ;;  %v1638_v40 = vpop.f32.mrb[63].mxu1  ;;  %v1664_v43 = vmax.f32 %v1644_v17, 0.0 }
 0x289   : > { %v1639_v25 = vadd.f32 %v1638_v40, %v1503_v6  ;;  %v1662_v26 = vmax.f32 %v1636_v20, 0.0  ;;  %2832 = vmatpush3.bf16.msra.mxu1 %v3082_v57  ;;  %v1685_v6 = vsub.s32 2, %v3571_v53  ;;  %v3086_v57 = vld [vmem:[%s3812_s4 + $0x10] sm:$0xff]  }
 0x28a   : > { %v1665_v51 = vmax.f32 %v1647_v22, 0.0  ;;  %2833 = vmatprep.subr.bf16.mxu1 %v3083_v12  ;;  %2855 = vmatprep.subr.bf16.mxu0 %v3086_v57 }
 0x28b   : > { %v1663_v56 = vmax.f32 %v1639_v25, 0.0  ;;  %v1686_v30 = vrot.slane %v3577_v55, %v1685_v6  ;;  %2856 = vmatpush3.bf16.msra.mxu0 %v3086_v57 }
 0x28c   : > { %v1673_v28 = vpack.c.bf16 %v1665_v51, %v1664_v43 }
 0x28d   : > { %v1672_v29 = vpack.c.bf16 %v1663_v56, %v1662_v26  ;;  %2834 = vmatpush3.bf16.msra.mxu1 %v3083_v12  ;;  %v3087_v12 = vld [vmem:[%s3812_s4 + $0x18] sm:$0xff]  }
 0x28e   : > { %2857 = vmatprep.subr.bf16.mxu0 %v3087_v12 }
 0x28f   : > { %2823 = vmatprep.mubr.msk.bf16.mxu1 %vm1528_vm0, %v1672_v29  ;;  %2858 = vmatpush3.bf16.msra.mxu0 %v3087_v12 }
 0x290   : > { %2824 = vmatmul.mubr.msk.bf16.gmra.mrb[68].mxu1 %vm1528_vm0, %v1673_v28 }
 0x333   : > { %v2813_v31 = vpop.f32.mrb[64].mxu0 }
 0x334   : > { %v1778_v32 = vadd.f32 %v2813_v31, %v1686_v30  ;;  %v1769_v34 = vpop.f32.mrb[65].mxu0 }
 0x335   : > { %v1770_v35 = vadd.f32 %v1769_v34, %v1686_v30  ;;  %v2814_v37 = vpop.f32.mrb[66].mxu0 }
 0x336   : > { %v1781_v38 = vadd.f32 %v2814_v37, %v1686_v30  ;;  %v1772_v39 = vpop.f32.mrb[67].mxu0  ;;  %v1834_v41 = vmax.f32 %v1778_v32, 0.0 }
 0x337   : > { %v1773_v7 = vadd.f32 %v1772_v39, %v1686_v30  ;;  %v1832_v59 = vmax.f32 %v1770_v35, 0.0 }
 0x338   : > { %v1835_v44 = vmax.f32 %v1781_v38, 0.0 }
 0x339   : > { %v1833_v45 = vmax.f32 %v1773_v7, 0.0 }
 0x33a   : > { %v1849_v62 = vpack.c.bf16 %v1835_v44, %v1834_v41 }
 0x33b   : > { %v1848_v42 = vpack.c.bf16 %v1833_v45, %v1832_v59 }
 0x33d   : > { %2835 = vmatprep.mubr.msk.bf16.mxu1 %vm1528_vm0, %v1848_v42 }
 0x33e   : > { %2836 = vmatmul.mubr.msk.bf16.vlgmr.msra.gmra.mrb[72].mxu1 %vm1528_vm0, %v1849_v62 }
 0x343   : > { %v2817_v8 = vpop.f32.mrb[68].mxu0 }
 0x344   : > { %v1794_v46 = vadd.f32 %v2817_v8, %v1686_v30  ;;  %v1785_v47 = vpop.f32.mrb[69].mxu0 }
 0x345   : > { %v1786_v48 = vadd.f32 %v1785_v47, %v1686_v30  ;;  %v2818_v11 = vpop.f32.mrb[70].mxu0 }
 0x346   : > { %v1797_v49 = vadd.f32 %v2818_v11, %v1686_v30  ;;  %v1788_v50 = vpop.f32.mrb[71].mxu0  ;;  %v1838_v54 = vmax.f32 %v1794_v46, 0.0 }
 0x347   : > { %v1789_v52 = vadd.f32 %v1788_v50, %v1686_v30  ;;  %v1836_v60 = vmax.f32 %v1786_v48, 0.0 }
 0x348   : > { %v1839_v58 = vmax.f32 %v1797_v49, 0.0 }
 0x349   : > { %v1837_v15 = vmax.f32 %v1789_v52, 0.0 }
 0x34a   : > { %v1851_v61 = vpack.c.bf16 %v1839_v58, %v1838_v54 }
 0x34b   : > { %v1850_v63 = vpack.c.bf16 %v1837_v15, %v1836_v60 }
 0x34d   : > { %2839 = vmatprep.mubr.msk.bf16.mxu1 %vm1528_vm0, %v1850_v63 }
 0x34e   : > { %2840 = vmatmul.mubr.msk.bf16.gmra.mrb[76].mxu1 %vm1528_vm0, %v1851_v61 }
 0x353   : > { %v2821_v18 = vpop.f32.mrb[64].mxu1 }
 0x354   : > { %v1810_v0 = vadd.f32 %v2821_v18, %v1686_v30  ;;  %v1801_v2 = vpop.f32.mrb[65].mxu1 }
 0x355   : > { %v1802_v24 = vadd.f32 %v1801_v2, %v1686_v30  ;;  %v2822_v3 = vpop.f32.mrb[66].mxu1 }
 0x356   : > { %v1813_v4 = vadd.f32 %v2822_v3, %v1686_v30  ;;  %v1804_v9 = vpop.f32.mrb[67].mxu1  ;;  %v1842_v10 = vmax.f32 %v1810_v0, 0.0 }
 0x357   : > { %v1805_v27 = vadd.f32 %v1804_v9, %v1686_v30  ;;  %v1840_v33 = vmax.f32 %v1802_v24, 0.0 }
 0x358   : > { %v1843_v13 = vmax.f32 %v1813_v4, 0.0 }
 0x359   : > { %v1841_v36 = vmax.f32 %v1805_v27, 0.0 }
 0x35a   : > { %v1853_v1 = vpack.c.bf16 %v1843_v13, %v1842_v10 }
 0x35b   : > { %v1852_v14 = vpack.c.bf16 %v1841_v36, %v1840_v33 }
 0x35d   : > { %2843 = vmatprep.mubr.msk.bf16.mxu1 %vm1528_vm0, %v1852_v14 }
 0x35e   : > { %2844 = vmatmul.mubr.msk.bf16.gmra.mrb[80].mxu1 %vm1528_vm0, %v1853_v1 }
 0x363   : > { %v2825_v5 = vpop.f32.mrb[68].mxu1 }
 0x364   : > { %v1826_v17 = vadd.f32 %v2825_v5, %v1686_v30  ;;  %v1817_v19 = vpop.f32.mrb[69].mxu1 }
 0x365   : > { %v1818_v20 = vadd.f32 %v1817_v19, %v1686_v30  ;;  %v2826_v21 = vpop.f32.mrb[70].mxu1 }
 0x366   : > { %v1829_v22 = vadd.f32 %v2826_v21, %v1686_v30  ;;  %v1820_v40 = vpop.f32.mrb[71].mxu1  ;;  %v1846_v43 = vmax.f32 %v1826_v17, 0.0 }
 0x367   : > { %v1821_v25 = vadd.f32 %v1820_v40, %v1686_v30  ;;  %v1844_v26 = vmax.f32 %v1818_v20, 0.0 }
 0x368   : > { %v1847_v51 = vmax.f32 %v1829_v22, 0.0 }
 0x369   : > { %v1845_v56 = vmax.f32 %v1821_v25, 0.0 }
 0x36a   : > { %v1855_v28 = vpack.c.bf16 %v1847_v51, %v1846_v43 }
 0x36b   : > { %v1854_v29 = vpack.c.bf16 %v1845_v56, %v1844_v26  ;;  %v2472_v26 = vld [vmem:[%s3813_s5] ss:$0 sm:$0xff] }
 0x36d   : > { %2847 = vmatprep.mubr.msk.bf16.mxu1 %vm1528_vm0, %v1854_v29 }
 0x36e   : > { %2848 = vmatmul.mubr.msk.bf16.gmra.mrb[84].mxu1 %vm1528_vm0, %v1855_v28 }
 0x411   : > { %v2837_v6 = vpop.f32.mrb[72].mxu1 }
 0x412   : > { %v1960_v30 = vadd.f32 %v2837_v6, %v1868_v23  ;;  %v1951_v31 = vpop.f32.mrb[73].mxu1 }
 0x413   : > { %v1952_v32 = vadd.f32 %v1951_v31, %v1868_v23  ;;  %v2838_v34 = vpop.f32.mrb[74].mxu1 }
 0x414   : > { %v1963_v35 = vadd.f32 %v2838_v34, %v1868_v23  ;;  %v1954_v37 = vpop.f32.mrb[75].mxu1  ;;  %v2016_v39 = vmax.f32 %v1960_v30, 0.0 }
 0x415   : > { %v1955_v38 = vadd.f32 %v1954_v37, %v1868_v23  ;;  %v2014_v41 = vmax.f32 %v1952_v32, 0.0 }
 0x416   : > { %v2017_v7 = vmax.f32 %v1963_v35, 0.0 }
 0x417   : > { %v2015_v44 = vmax.f32 %v1955_v38, 0.0 }
 0x418   : > { %v2031_v59 = vpack.c.bf16 %v2017_v7, %v2016_v39 }
 0x419   : > { %v2030_v45 = vpack.c.bf16 %v2015_v44, %v2014_v41 }
 0x41b   : > { %2859 = vmatprep.mubr.msk.bf16.mxu0 %vm1528_vm0, %v2030_v45 }
 0x41c   : > { %2860 = vmatmul.mubr.msk.bf16.vlgmr.msra.gmra.mrb[72].mxu0 %vm1528_vm0, %v2031_v59 }
 0x421   : > { %v2841_v53 = vpop.f32.mrb[76].mxu1 }
 0x422   : > { %v1976_v55 = vadd.f32 %v2841_v53, %v1868_v23  ;;  %v1967_v62 = vpop.f32.mrb[77].mxu1 }
 0x423   : > { %v1968_v42 = vadd.f32 %v1967_v62, %v1868_v23  ;;  %v2842_v8 = vpop.f32.mrb[78].mxu1 }
 0x424   : > { %v1979_v46 = vadd.f32 %v2842_v8, %v1868_v23  ;;  %v1970_v47 = vpop.f32.mrb[79].mxu1  ;;  %v2020_v11 = vmax.f32 %v1976_v55, 0.0 }
 0x425   : > { %v1971_v48 = vadd.f32 %v1970_v47, %v1868_v23  ;;  %v2018_v50 = vmax.f32 %v1968_v42, 0.0 }
 0x426   : > { %v2021_v49 = vmax.f32 %v1979_v46, 0.0 }
 0x427   : > { %v2019_v52 = vmax.f32 %v1971_v48, 0.0 }
 0x428   : > { %v2033_v54 = vpack.c.bf16 %v2021_v49, %v2020_v11 }
 0x429   : > { %v2032_v58 = vpack.c.bf16 %v2019_v52, %v2018_v50 }
 0x42b   : > { %2863 = vmatprep.mubr.msk.bf16.mxu0 %vm1528_vm0, %v2032_v58 }
 0x42c   : > { %2864 = vmatmul.mubr.msk.bf16.gmra.mrb[76].mxu0 %vm1528_vm0, %v2033_v54 }
 0x431   : > { %v2845_v60 = vpop.f32.mrb[80].mxu1 }
 0x432   : > { %v1992_v15 = vadd.f32 %v2845_v60, %v1868_v23  ;;  %v1983_v61 = vpop.f32.mrb[81].mxu1 }
 0x433   : > { %v1984_v63 = vadd.f32 %v1983_v61, %v1868_v23  ;;  %v2846_v18 = vpop.f32.mrb[82].mxu1 }
 0x434   : > { %v1995_v0 = vadd.f32 %v2846_v18, %v1868_v23  ;;  %v1986_v2 = vpop.f32.mrb[83].mxu1  ;;  %v2024_v3 = vmax.f32 %v1992_v15, 0.0 }
 0x435   : > { %v1987_v24 = vadd.f32 %v1986_v2, %v1868_v23  ;;  %v2022_v9 = vmax.f32 %v1984_v63, 0.0 }
 0x436   : > { %v2025_v4 = vmax.f32 %v1995_v0, 0.0 }
 0x437   : > { %v2023_v27 = vmax.f32 %v1987_v24, 0.0 }
 0x438   : > { %v2035_v10 = vpack.c.bf16 %v2025_v4, %v2024_v3 }
 0x439   : > { %v2034_v13 = vpack.c.bf16 %v2023_v27, %v2022_v9 }
 0x43b   : > { %2867 = vmatprep.mubr.msk.bf16.mxu0 %vm1528_vm0, %v2034_v13 }
 0x43c   : > { %2868 = vmatmul.mubr.msk.bf16.gmra.mrb[80].mxu0 %vm1528_vm0, %v2035_v10 }
 0x441   : > { %v2849_v33 = vpop.f32.mrb[84].mxu1 }
 0x442   : > { %v2008_v36 = vadd.f32 %v2849_v33, %v1868_v23  ;;  %v1999_v1 = vpop.f32.mrb[85].mxu1 }
 0x443   : > { %v2000_v14 = vadd.f32 %v1999_v1, %v1868_v23  ;;  %v2850_v5 = vpop.f32.mrb[86].mxu1 }
 0x444   : > { %v2011_v17 = vadd.f32 %v2850_v5, %v1868_v23  ;;  %v2002_v19 = vpop.f32.mrb[87].mxu1  ;;  %v2028_v21 = vmax.f32 %v2008_v36, 0.0 }
 0x445   : > { %v2003_v20 = vadd.f32 %v2002_v19, %v1868_v23  ;;  %v2026_v40 = vmax.f32 %v2000_v14, 0.0 }
 0x446   : > { %v2029_v22 = vmax.f32 %v2011_v17, 0.0 }
 0x447   : > { %v2027_v25 = vmax.f32 %v2003_v20, 0.0 }
 0x448   : > { %v2037_v43 = vpack.c.bf16 %v2029_v22, %v2028_v21 }
 0x449   : > { %v2036_v51 = vpack.c.bf16 %v2027_v25, %v2026_v40 }
 0x44b   : > { %2871 = vmatprep.mubr.msk.bf16.mxu0 %vm1528_vm0, %v2036_v51 }
 0x44c   : > { %2872 = vmatmul.mubr.msk.bf16.gmra.mrb[84].mxu0 %vm1528_vm0, %v2037_v43 }
 0x4ef   : > { %v2861_v56 = vpop.f32.mrb[72].mxu0 }
 0x4f0   : > { %v2143_v28 = vadd.f32 %v2861_v56, %v2472_v26  ;;  %v2134_v29 = vpop.f32.mrb[73].mxu0 }
 0x4f1   : > { %v2135_v57 = vadd.f32 %v2472_v26, %v2134_v29  ;;  %v2862_v12 = vpop.f32.mrb[74].mxu0 }
 0x4f2   : > { %2199 = vst [vmem:[%s3739_s19 + $0x10] sm:$0xff] %v2143_v28  ;;  %v2146_v16 = vadd.f32 %v2862_v12, %v2472_v26  ;;  %v2137_v23 = vpop.f32.mrb[75].mxu0 }
 0x4f3   : > { %2197 = vst [vmem:[%s3739_s19] sm:$0xff] %v2135_v57  ;;  %v2138_v6 = vadd.f32 %v2472_v26, %v2137_v23 }
 0x4f4   : > { %2200 = vst [vmem:[%s3739_s19 + $0x18] sm:$0xff] %v2146_v16 }
 0x4f5   : > { %2198 = vst [vmem:[%s3739_s19 + $0x8] sm:$0xff] %v2138_v6 }
 0x4ff   : > { %v2865_v30 = vpop.f32.mrb[76].mxu0 }
 0x500   : > { %v2159_v31 = vadd.f32 %v2865_v30, %v2472_v26  ;;  %v2150_v32 = vpop.f32.mrb[77].mxu0 }
 0x501   : > { %v2151_v34 = vadd.f32 %v2472_v26, %v2150_v32  ;;  %v2866_v35 = vpop.f32.mrb[78].mxu0 }
 0x502   : > { %2203 = vst [vmem:[%s3739_s19 + $0x30] sm:$0xff] %v2159_v31  ;;  %v2162_v37 = vadd.f32 %v2866_v35, %v2472_v26  ;;  %v2153_v38 = vpop.f32.mrb[79].mxu0 }
 0x503   : > { %2201 = vst [vmem:[%s3739_s19 + $0x20] sm:$0xff] %v2151_v34  ;;  %v2154_v39 = vadd.f32 %v2472_v26, %v2153_v38 }
 0x504   : > { %2204 = vst [vmem:[%s3739_s19 + $0x38] sm:$0xff] %v2162_v37 }
 0x505   : > { %2202 = vst [vmem:[%s3739_s19 + $0x28] sm:$0xff] %v2154_v39 }
 0x50f   : > { %v2869_v7 = vpop.f32.mrb[80].mxu0 }
 0x510   : > { %v2175_v41 = vadd.f32 %v2869_v7, %v2472_v26  ;;  %v2166_v44 = vpop.f32.mrb[81].mxu0 }
 0x511   : > { %v2167_v59 = vadd.f32 %v2472_v26, %v2166_v44  ;;  %v2870_v45 = vpop.f32.mrb[82].mxu0 }
 0x512   : > { %2207 = vst [vmem:[%s3739_s19 + $0x50] sm:$0xff] %v2175_v41  ;;  %v2178_v53 = vadd.f32 %v2870_v45, %v2472_v26  ;;  %v2169_v55 = vpop.f32.mrb[83].mxu0 }
 0x513   : > { %2205 = vst [vmem:[%s3739_s19 + $0x40] sm:$0xff] %v2167_v59  ;;  %v2170_v62 = vadd.f32 %v2472_v26, %v2169_v55 }
 0x514   : > { %2208 = vst [vmem:[%s3739_s19 + $0x58] sm:$0xff] %v2178_v53 }
 0x515   : > { %2206 = vst [vmem:[%s3739_s19 + $0x48] sm:$0xff] %v2170_v62 }
 0x51f   : > { %v2873_v42 = vpop.f32.mrb[84].mxu0 }
 0x520   : > { %v2191_v8 = vadd.f32 %v2873_v42, %v2472_v26  ;;  %v2182_v46 = vpop.f32.mrb[85].mxu0 }
 0x521   : > { %v2183_v47 = vadd.f32 %v2472_v26, %v2182_v46  ;;  %v2874_v48 = vpop.f32.mrb[86].mxu0 }
 0x522   : > { %2211 = vst [vmem:[%s3739_s19 + $0x70] sm:$0xff] %v2191_v8  ;;  %v2194_v11 = vadd.f32 %v2874_v48, %v2472_v26  ;;  %v2185_v49 = vpop.f32.mrb[87].mxu0 }
 0x523   : > { %2209 = vst [vmem:[%s3739_s19 + $0x60] sm:$0xff] %v2183_v47  ;;  %v2186_v50 = vadd.f32 %v2472_v26, %v2185_v49 }
 0x524   : > { %2212 = vst [vmem:[%s3739_s19 + $0x78] sm:$0xff] %v2194_v11 }
 0x525   : > { %2210 = vst [vmem:[%s3739_s19 + $0x68] sm:$0xff] %v2186_v50 }
 0x526   : > { %3131 = shalt.err (!%p3128_p2)
}
 0x527   : > { %s3132_s15 = scalar_lea.hbm %s3759_s7, 2048  ;;  %s3136_s18 = scalar_lea.hbm %s3814_s6, 4096 }
 0x528   : > { %p3133_p4 = scmp.ne.s32.totalorder %s3759_s7, %s3132_s15  ;;  %p3137_p9 = scmp.lt.u32.totalorder %s3759_s7, %s3814_s6 }
 0x529   : > { %p3138_p1 = scmp.lt.u32.totalorder %s3136_s18, %s3132_s15  ;;  %p3140_p6 = scmp.lt.u32.totalorder %s3132_s15, %s3759_s7 }
 0x52a   : > { %p3134_p5 = pnand %p3133_p4, %p3820_p11 }
 0x52b   : > { %p3139_p3 = por %p3138_p1, %p3137_p9 }
 0x52c   : > { %p3135_p7 = pneg %p3134_p5 }
 0x52d   : > { %p3141_p12 = por %p3140_p6, %p3139_p3 }
 0x52f   : > { %p3142_p13 = pnand %p3141_p12, %p3135_p7 }
 0x531   : > { %3145 = shalt.err (!%p3142_p13)
}
 0x532   : > { %s3190_s14 = smov 128   ;;  %s3191_s17 = smov 8  }
 0x533   : > { %2888 = dma.vmem_to_hbm [thread:$0]  (%p3820_p11), %s3761_s12, 2048, %s3759_s7, %s2214_s25, %s3190_s14, %s3190_s14, %s3191_s17  }
 0x534 PF: > { %s2242_s20 = sand.u32 1, %s3172_s21   ;;  %p3821_p8 = scmp.ne.s32.totalorder %s3818_s9, 0 }
 0x535   : > { %p3822_p10 = scmp.ge.s32.totalorder %s3184_s24, 2  ;;  %s2243_s26 = scalar_lea.sflag [#allocation4], %s2242_s20 }
 0x537   : > { %p2895_p0 = pnand %p3822_p10, %p3821_p8 }
 0x539   : > { %3167 = dma.done.wait (!%p2895_p0), %s2243_s26, 2048  }
 0x53a   : > { %3169 = vsyncadd (!%p2895_p0), %s2243_s26, 4294965248  ;;  %p19_p2 = scmp.ge.s32.totalorder %s3252_s27, 4   ;;  %s3823_s21 = smov %s3176_s22 }
 0x53b   : > { %s3824_s22 = smov %s3180_s23  ;;  %s3825_s23 = smov %s3264_s30 }
 0x53c   : > { %s3826_s24 = smov %s3252_s27  ;;  %21 = sbr.rel (!%p19_p2) target bundleno = 5 (0x5), region = 91 }
 0x543   :  { %2248 = vsyncpa [#allocation3], 1 }
 0x544   :  { %2250 = vsyncpa [#allocation3 + $0x1], 1 }
 0x545   :  { %2251 = vsyncpa [#allocation4], 1 }
 0x546   :  { %2253 = vsyncpa [#allocation4 + $0x1], 1 }

</bundles_post_ra>
